<compile_context>
chip_gen: v7x
topology: tpu7x:2x2x1
jax: 0.10.0
libtpu: 0.0.40
codegen_flags: <defaults>
</compile_context>

<pallas_src>
import functools

import jax
import jax.numpy as jnp
from jax.experimental import pallas as pl
from jax.experimental.pallas import tpu as pltpu


TILE_M = 1024   # rows per M-tile; per-tile VMEM footprint is tiny, so large
                # tiles amortize the ~0.35us/grid-step overhead.


def _round_up(x, m):
    return (x + m - 1) // m * m


@functools.lru_cache(maxsize=None)
def _vmem_limit_bytes():
    """Per-generation scoped-VMEM cap: ~3/4 of physical VMEM (96 MiB on
    v5e/v6e, 48 MiB on v7x).  Falls back to a v7x-safe 48 MiB."""
    default = 48 * 1024 * 1024
    try:
        info = pltpu.get_tpu_info()
        phys = getattr(info, "vmem_capacity_bytes", None)
        if not phys:
            return default
        return int(min(phys * 3 // 4, 100 * 1024 * 1024))
    except Exception:
        return default


@functools.lru_cache(maxsize=None)
def _compiler_params():
    return pltpu.CompilerParams(
        dimension_semantics=("parallel",),      # split the M axis across TCs
        vmem_limit_bytes=_vmem_limit_bytes(),
    )


def _tile_rows(M, tile_m):
    """Rows per M-tile.  Keeps >= 2 grid blocks whenever M >= 16 so the
    "parallel" grid axis can actually split across both v7x TensorCores."""
    if M > tile_m:
        return tile_m
    if M >= 16:
        return max(_round_up(pl.cdiv(M, 2), 8), 8)
    return M


# ----------------------------------------------------------------------------
# Kernel 1: fused  fc1 -> SiLU -> fc2 -> SiLU   (both weights VMEM-resident)
# ----------------------------------------------------------------------------
def _fc_fused_kernel(x_ref, w1_ref, b1_ref, w2_ref, b2_ref, o_ref):
    h = jnp.dot(x_ref[...], w1_ref[...],
                preferred_element_type=jnp.float32) + b1_ref[...]
    h = h * jax.nn.sigmoid(h)                                   # SiLU in f32
    y = jnp.dot(h.astype(jnp.bfloat16), w2_ref[...],
                preferred_element_type=jnp.float32) + b2_ref[...]
    y = y * jax.nn.sigmoid(y)
    o_ref[...] = y.astype(o_ref.dtype)


def fc_forward(z, w1, b1, w2, b2, *, tile_m=TILE_M):
    x = z.astype(jnp.bfloat16)
    M, K1 = x.shape
    N1 = w1.shape[1]
    N2 = w2.shape[1]
    tm = _tile_rows(M, tile_m)
    # TODO(synk): for very large fc2 widths (real DreamerV3 scale) tile N2 or
    # split fc1/fc2 so the resident W2 + output tile stay inside v7x's 64 MiB.
    return pl.pallas_call(
        _fc_fused_kernel,
        out_shape=jax.ShapeDtypeStruct((M, N2), jnp.bfloat16),   # bf16 out
        grid=(pl.cdiv(M, tm),),
        in_specs=[
            pl.BlockSpec((tm, K1), lambda i: (i, 0)),
            pl.BlockSpec((K1, N1), lambda i: (0, 0)),    # resident
            pl.BlockSpec((1, N1), lambda i: (0, 0)),
            pl.BlockSpec((N1, N2), lambda i: (0, 0)),    # resident
            pl.BlockSpec((1, N2), lambda i: (0, 0)),
        ],
        out_specs=pl.BlockSpec((tm, N2), lambda i: (i, 0)),
        compiler_params=_compiler_params(),
    )(x, w1, b1, w2, b2)


# ----------------------------------------------------------------------------
# Kernel 2: sub-pixel ConvTranspose matmul, fused with bias + LayerNorm + act
#   Y = act( LN_per_parity_group( X @ W + b_tiled ) )
#   X: (M, 9*Cin) 3x3 patches,  W: (9*Cin, 4*Cout_pad),  output: (M, 4*Cout_pad)
# ----------------------------------------------------------------------------
def _convT_kernel(x_ref, w_ref, b_ref, g_ref, bt_ref, o_ref, *,
                  cout, cout_pad, use_ln, act):
    y = jnp.dot(x_ref[...], w_ref[...],
                preferred_element_type=jnp.float32) + b_ref[...]
    if use_ln:
        # LayerNorm over channels, independently per output-parity group.
        # Each normalized+activated group is written straight to its o_ref
        # slice (no concatenate -> no extra (tm, N) f32 temporary).
        for p in range(4):
            lo = p * cout_pad
            yp = y[:, lo:lo + cout]
            mean = jnp.mean(yp, axis=-1, keepdims=True)
            var = jnp.mean(jnp.square(yp - mean), axis=-1, keepdims=True)
            yp = (yp - mean) * jax.lax.rsqrt(var + 1e-5)
            yp = yp * g_ref[...] + bt_ref[...]
            if act == "silu":
                yp = yp * jax.nn.sigmoid(yp)
            elif act == "sigmoid":
                yp = jax.nn.sigmoid(yp)
            o_ref[:, lo:lo + cout] = yp.astype(o_ref.dtype)
    else:
        if act == "silu":
            y = y * jax.nn.sigmoid(y)
        elif act == "sigmoid":
            y = jax.nn.sigmoid(y)
        o_ref[...] = y.astype(o_ref.dtype)


def _convT_matmul(x, w, b, g, bt, *, cout, cout_pad, use_ln, act, out_dtype,
                  tile_m=TILE_M):
    M, K = x.shape
    N = w.shape[1]
    tm = _tile_rows(M, tile_m)
    kern = functools.partial(_convT_kernel, cout=cout, cout_pad=cout_pad,
                             use_ln=use_ln, act=act)
    return pl.pallas_call(
        kern,
        out_shape=jax.ShapeDtypeStruct((M, N), out_dtype),
        grid=(pl.cdiv(M, tm),),
        in_specs=[
            pl.BlockSpec((tm, K), lambda i: (i, 0)),
            pl.BlockSpec((K, N), lambda i: (0, 0)),             # resident weight
            pl.BlockSpec((1, N), lambda i: (0, 0)),             # parity-tiled bias
            pl.BlockSpec((1, g.shape[1]), lambda i: (0, 0)),    # LN gamma
            pl.BlockSpec((1, bt.shape[1]), lambda i: (0, 0)),   # LN beta
        ],
        out_specs=pl.BlockSpec((tm, N), lambda i: (i, 0)),
        compiler_params=_compiler_params(),
    )(x, w, b, g, bt)


def conv_transpose_block(x_nhwc, w_k, b_t, gamma, beta, *, cout, use_ln, act,
                         out_dtype):
    """ConvTranspose2d(k=4, s=2, p=1) (+ LayerNorm(C) + act) via the sub-pixel
    decomposition: output parity (r, c) at (2i+r, 2j+c) is a 2x2 stride-1 conv
    of the input; all 4 parities come from one matmul over 3x3 patches with a
    combined (9*Cin, 4*Cout_pad) weight, then depth-to-space reassembly."""
    B, H, W, Cin = x_nhwc.shape
    N = w_k.shape[1]
    cout_pad = N // 4
    assert (not use_ln) or cout_pad == cout
    x_nhwc = x_nhwc.astype(jnp.bfloat16)           # bf16 halo / patch traffic
    xp = jnp.pad(x_nhwc, ((0, 0), (1, 1), (1, 1), (0, 0)))
    # TODO(synk): move the 3x3 patch gather in-kernel (halo DMA over a pl.ANY
    # input or pl.Element row offsets) so the 9x patch tensor never
    # round-trips HBM, and fuse depth-to-space via a per-parity output
    # index_map.  For now the gather/d2s run in XLA on bf16 data.
    cols = [xp[:, ph:ph + H, pw:pw + W, :]
            for ph in range(3) for pw in range(3)]
    patches = jnp.concatenate(cols, axis=-1)                # (B, H, W, 9*Cin)
    X = patches.reshape(B * H * W, 9 * Cin)
    Y = _convT_matmul(X, w_k, b_t, gamma, beta, cout=cout, cout_pad=cout_pad,
                      use_ln=use_ln, act=act, out_dtype=out_dtype)
    # depth-to-space: (b, i, j, r, c, co) -> (b, 2i+r, 2j+c, co); drop pad cols.
    Y = Y.reshape(B, H, W, 2, 2, cout_pad)[..., :cout]
    Y = Y.transpose(0, 1, 3, 2, 4, 5).reshape(B, 2 * H, 2 * W, cout)
    return Y


# ----------------------------------------------------------------------------
# One-time parameter preparation (weight reordering/padding done at init)
# ----------------------------------------------------------------------------
def make_subpixel_weight(wt, cout_pad):
    """ConvTranspose2d weight (Cin, Cout, 4, 4) -> combined parity weight
    (9*Cin, 4*cout_pad).  Row = (ph*3+pw)*Cin + cin (3x3 offset, dh/dw=ph-1),
    Col = (r*2+c)*cout_pad + cout (output parity r, c in {0,1}); the channel
    axis is zero-padded to cout_pad for lane-dense stores."""
    Cin, Cout = wt.shape[0], wt.shape[1]
    # Which ConvTranspose tap feeds output parity r from input offset dh:
    #   r=0: dh=-1 -> kh=3, dh=0 -> kh=1 ;  r=1: dh=0 -> kh=2, dh=+1 -> kh=0
    tap = {(0, 0): 3, (0, 1): 1, (1, 1): 2, (1, 2): 0}      # (r, ph) -> kh
    W = jnp.zeros((3, 3, Cin, 2, 2, Cout), jnp.float32)
    for r in range(2):
        for c in range(2):
            for ph in range(3):
                kh = tap.get((r, ph))
                if kh is None:
                    continue
                for pw in range(3):
                    kw = tap.get((c, pw))
                    if kw is None:
                        continue
                    W = W.at[ph, pw, :, r, c, :].set(wt[:, :, kh, kw])
    if cout_pad > Cout:
        W = jnp.pad(W, ((0, 0),) * 5 + ((0, cout_pad - Cout),))
    return W.reshape(9 * Cin, 4 * cout_pad)


def make_tiled_bias(b, cout_pad):
    Cout = b.shape[0]
    bt = jnp.zeros((4, cout_pad), jnp.float32).at[:, :Cout].set(
        b.astype(jnp.float32))
    return bt.reshape(1, 4 * cout_pad)


def prepare_params(raw):
    """Convert PyTorch-layout params to kernel-ready layout (run once)."""
    p = {
        "fc1_w": raw["fc1_w"].astype(jnp.bfloat16),
        "fc1_b": raw["fc1_b"].reshape(1, -1).astype(jnp.float32),
        "fc2_w": raw["fc2_w"].astype(jnp.bfloat16),
        "fc2_b": raw["fc2_b"].reshape(1, -1).astype(jnp.float32),
    }
    for name in ("c1", "c2", "c3"):
        wt = raw[f"{name}_w"]
        cout_pad = _round_up(wt.shape[1], 32)     # 4*cout_pad multiple of 128
        p[f"{name}_w"] = make_subpixel_weight(wt, cout_pad).astype(jnp.bfloat16)
        p[f"{name}_b"] = make_tiled_bias(raw[f"{name}_b"], cout_pad)
    p["n1_g"] = raw["n1_g"].reshape(1, -1).astype(jnp.float32)
    p["n1_b"] = raw["n1_b"].reshape(1, -1).astype(jnp.float32)
    p["n2_g"] = raw["n2_g"].reshape(1, -1).astype(jnp.float32)
    p["n2_b"] = raw["n2_b"].reshape(1, -1).astype(jnp.float32)
    cp3 = _round_up(raw["c3_b"].shape[0], 32)
    p["n3_g"] = jnp.ones((1, cp3), jnp.float32)   # dummies: conv3 has no LN
    p["n3_b"] = jnp.zeros((1, cp3), jnp.float32)
    return p


# ----------------------------------------------------------------------------
# Full decoder forward (jitted; glue reshapes/transposes fuse in XLA)
# ----------------------------------------------------------------------------
@functools.partial(jax.jit,
                   static_argnames=("z_dim", "output_dim", "height", "width"))
def decoder_forward(z, params, *, z_dim, output_dim, height, width):
    x = fc_forward(z, params["fc1_w"], params["fc1_b"],
                   params["fc2_w"], params["fc2_b"])               # bf16
    B = z.shape[0]
    h8, w8 = height // 8, width // 8
    # PyTorch view(B, z_dim, h8, w8) is NCHW -> convert to NHWC for the convs.
    x = x.reshape(B, z_dim, h8, w8).transpose(0, 2, 3, 1)
    # conv1 -> LayerNorm(64) -> SiLU          (bf16 output)
    x = conv_transpose_block(x, params["c1_w"], params["c1_b"],
                             params["n1_g"], params["n1_b"],
                             cout=params["n1_g"].shape[1],
                             use_ln=True, act="silu", out_dtype=jnp.bfloat16)
    # conv2 -> LayerNorm(32) -> SiLU          (bf16 output)
    x = conv_transpose_block(x, params["c2_w"], params["c2_b"],
                             params["n2_g"], params["n2_b"],
                             cout=params["n2_g"].shape[1],
                             use_ln=True, act="silu", out_dtype=jnp.bfloat16)
    # conv3 -> sigmoid                        (final layer stays f32)
    x = conv_transpose_block(x, params["c3_w"], params["c3_b"],
                             params["n3_g"], params["n3_b"],
                             cout=output_dim,
                             use_ln=False, act="sigmoid", out_dtype=jnp.float32)
    return x.transpose(0, 3, 1, 2)     # back to NCHW (PyTorch convention)


# ----------------------------------------------------------------------------
# Pure-JAX f32 reference (mirrors the PyTorch Decoder.forward exactly)
# ----------------------------------------------------------------------------
def _ref_conv_transpose(x, w, b):
    """ConvTranspose2d(k=4, s=2, p=1), PyTorch semantics, f32, NCHW."""
    wf = jnp.transpose(w[:, :, ::-1, ::-1], (1, 0, 2, 3))   # (Cout,Cin,kH,kW)
    y = jax.lax.conv_general_dilated(
        x, wf, window_strides=(1, 1), padding=((2, 2), (2, 2)),
        lhs_dilation=(2, 2), rhs_dilation=(1, 1),
        dimension_numbers=("NCHW", "OIHW", "NCHW"))
    return y + b.reshape(1, -1, 1, 1)


def _ref_layernorm_nhwc(x, g, b, eps=1e-5):
    mean = jnp.mean(x, axis=-1, keepdims=True)
    var = jnp.mean(jnp.square(x - mean), axis=-1, keepdims=True)
    return (x - mean) * jax.lax.rsqrt(var + eps) * g + b


def decoder_reference(z, raw, *, z_dim, height, width):
    silu = lambda v: v * jax.nn.sigmoid(v)
    x = silu(z @ raw["fc1_w"] + raw["fc1_b"])
    x = silu(x @ raw["fc2_w"] + raw["fc2_b"])
    B = z.shape[0]
    x = x.reshape(B, z_dim, height // 8, width // 8)
    x = _ref_conv_transpose(x, raw["c1_w"], raw["c1_b"])
    x = _ref_layernorm_nhwc(x.transpose(0, 2, 3, 1), raw["n1_g"], raw["n1_b"])
    x = silu(x.transpose(0, 3, 1, 2))
    x = _ref_conv_transpose(x, raw["c2_w"], raw["c2_b"])
    x = _ref_layernorm_nhwc(x.transpose(0, 2, 3, 1), raw["n2_g"], raw["n2_b"])
    x = silu(x.transpose(0, 3, 1, 2))
    x = _ref_conv_transpose(x, raw["c3_w"], raw["c3_b"])
    return jax.nn.sigmoid(x)


# ----------------------------------------------------------------------------
# Deterministic synthetic parameters (shapes follow Decoder.__init__)
# ----------------------------------------------------------------------------
def init_params(key, h_dim, z_dim, output_dim, height, width):
    ks = jax.random.split(key, 10)
    f = lambda k, shape, s=0.05: (s * jax.random.normal(k, shape)).astype(
        jnp.float32)
    fc2_out = z_dim * (height // 8) * (width // 8)
    return {
        # Linear weights stored as (in, out) so the kernel does x @ W.
        "fc1_w": f(ks[0], (h_dim + z_dim, 256)),
        "fc1_b": f(ks[1], (256,)),
        "fc2_w": f(ks[2], (256, fc2_out)),
        "fc2_b": f(ks[3], (fc2_out,)),
        # ConvTranspose2d weights in PyTorch layout (Cin, Cout, kH, kW).
        "c1_w": f(ks[4], (z_dim, 64, 4, 4)),
        "c1_b": f(ks[5], (64,)),
        "c2_w": f(ks[6], (64, 32, 4, 4)),
        "c2_b": f(ks[7], (32,)),
        "c3_w": f(ks[8], (32, output_dim, 4, 4)),
        "c3_b": f(ks[9], (output_dim,)),
        # LayerNorm affine params (PyTorch init: ones / zeros).
        "n1_g": jnp.ones((64,), jnp.float32),
        "n1_b": jnp.zeros((64,), jnp.float32),
        "n2_g": jnp.ones((32,), jnp.float32),
        "n2_b": jnp.zeros((32,), jnp.float32),
    }


if __name__ == "__main__":
    h_dim, z_dim, output_dim = 32, 4, 3
    height, width, batch = 16, 16, 2

    key = jax.random.PRNGKey(0)
    kp, kz = jax.random.split(key)
    raw = init_params(kp, h_dim, z_dim, output_dim, height, width)
    params = prepare_params(raw)
    z = jax.random.normal(kz, (batch, h_dim + z_dim), jnp.float32)

    out = decoder_forward(z, params, z_dim=z_dim, output_dim=output_dim,
                          height=height, width=width)
    out = jax.block_until_ready(out)

    assert out.shape == (batch, output_dim, height, width), out.shape
    assert bool(jnp.all(jnp.isfinite(out)))
    assert bool(jnp.all((out >= 0.0) & (out <= 1.0)))      # sigmoid range

    # Tolerance check against the pure-f32 JAX reference (bf16 kernels).
    ref = decoder_reference(z, raw, z_dim=z_dim, height=height, width=width)
    assert float(jnp.max(jnp.abs(out - ref))) < 3e-2

    print("KERNEL_OK")
</pallas_src>

<mosaic_0001>
module attributes {stable_mosaic.version = 11 : i64} {
  func.func @_fc_fused_kernel(%arg0: i32, %arg1: memref<2x36xbf16, #tpu.memory_space<vmem>>, %arg2: memref<36x256xbf16, #tpu.memory_space<vmem>>, %arg3: memref<1x256xf32, #tpu.memory_space<vmem>>, %arg4: memref<256x16xbf16, #tpu.memory_space<vmem>>, %arg5: memref<1x16xf32, #tpu.memory_space<vmem>>, %arg6: memref<2x16xbf16, #tpu.memory_space<vmem>>) attributes {dimension_semantics = [#tpu.dimension_semantics<parallel>], iteration_bounds = array<i64: 1>, scalar_prefetch = 0 : i64, scratch_operands = 0 : i64, tpu.core_type = #tpu.core_type<tc>, window_params = [{transform_indices = @transform_0, window_bounds = array<i64: 2, 36>}, {pipeline_mode = #tpu.pipeline_mode<synchronous>, transform_indices = @transform_1, window_bounds = array<i64: 36, 256>}, {pipeline_mode = #tpu.pipeline_mode<synchronous>, transform_indices = @transform_2, window_bounds = array<i64: 1, 256>}, {pipeline_mode = #tpu.pipeline_mode<synchronous>, transform_indices = @transform_3, window_bounds = array<i64: 256, 16>}, {pipeline_mode = #tpu.pipeline_mode<synchronous>, transform_indices = @transform_4, window_bounds = array<i64: 1, 16>}, {transform_indices = @transform_5, window_bounds = array<i64: 2, 16>}]} {
    %c0 = arith.constant 0 : index
    %c0_0 = arith.constant 0 : index
    %0 = vector.load %arg1[%c0, %c0_0] : memref<2x36xbf16, #tpu.memory_space<vmem>>, vector<2x36xbf16>
    %c0_1 = arith.constant 0 : index
    %c0_2 = arith.constant 0 : index
    %1 = vector.load %arg2[%c0_1, %c0_2] : memref<36x256xbf16, #tpu.memory_space<vmem>>, vector<36x256xbf16>
    %cst = arith.constant dense<0.000000e+00> : vector<2x256xf32>
    %2 = tpu.matmul %0, %1, %cst {dimension_numbers = #tpu.dot_dimension_numbers<[1], [0], [0], [1], [0, 0, 1, 1], [], []>} : vector<2x36xbf16>, vector<36x256xbf16>, vector<2x256xf32> -> vector<2x256xf32>
    %c0_3 = arith.constant 0 : index
    %c0_4 = arith.constant 0 : index
    %3 = vector.load %arg3[%c0_3, %c0_4] : memref<1x256xf32, #tpu.memory_space<vmem>>, vector<1x256xf32>
    %4 = vector.broadcast %3 : vector<1x256xf32> to vector<2x256xf32>
    %5 = arith.addf %2, %4 : vector<2x256xf32>
    %6 = arith.negf %5 : vector<2x256xf32>
    %7 = math.exp %6 : vector<2x256xf32>
    %cst_5 = arith.constant 1.000000e+00 : f32
    %8 = vector.broadcast %cst_5 : f32 to vector<2x256xf32>
    %9 = arith.addf %8, %7 : vector<2x256xf32>
    %10 = arith.divf %8, %9 : vector<2x256xf32>
    %11 = arith.mulf %5, %10 : vector<2x256xf32>
    %12 = arith.truncf %11 : vector<2x256xf32> to vector<2x256xbf16>
    %c0_6 = arith.constant 0 : index
    %c0_7 = arith.constant 0 : index
    %13 = vector.load %arg4[%c0_6, %c0_7] : memref<256x16xbf16, #tpu.memory_space<vmem>>, vector<256x16xbf16>
    %cst_8 = arith.constant dense<0.000000e+00> : vector<2x16xf32>
    %14 = tpu.matmul %12, %13, %cst_8 {dimension_numbers = #tpu.dot_dimension_numbers<[1], [0], [0], [1], [0, 0, 1, 1], [], []>} : vector<2x256xbf16>, vector<256x16xbf16>, vector<2x16xf32> -> vector<2x16xf32>
    %c0_9 = arith.constant 0 : index
    %c0_10 = arith.constant 0 : index
    %15 = vector.load %arg5[%c0_9, %c0_10] : memref<1x16xf32, #tpu.memory_space<vmem>>, vector<1x16xf32>
    %16 = vector.broadcast %15 : vector<1x16xf32> to vector<2x16xf32>
    %17 = arith.addf %14, %16 : vector<2x16xf32>
    %18 = arith.negf %17 : vector<2x16xf32>
    %19 = math.exp %18 : vector<2x16xf32>
    %cst_11 = arith.constant 1.000000e+00 : f32
    %20 = vector.broadcast %cst_11 : f32 to vector<2x16xf32>
    %21 = arith.addf %20, %19 : vector<2x16xf32>
    %22 = arith.divf %20, %21 : vector<2x16xf32>
    %23 = arith.mulf %17, %22 : vector<2x16xf32>
    %24 = arith.truncf %23 : vector<2x16xf32> to vector<2x16xbf16>
    %c0_12 = arith.constant 0 : index
    %c0_13 = arith.constant 0 : index
    %25 = vector.load %arg6[%c0_12, %c0_13] : memref<2x16xbf16, #tpu.memory_space<vmem>>, vector<2x16xbf16>
    tpu.vector_store %arg6[%c0_12, %c0_13], %24 {strides = array<i32>} : memref<2x16xbf16, #tpu.memory_space<vmem>>, vector<2x16xbf16>,
    return
  }
  func.func @transform_0(%arg0: i32) -> (i32, i32) {
    %c0_i32 = arith.constant 0 : i32
    %c0_i32_0 = arith.constant 0 : i32
    return %arg0, %c0_i32 : i32, i32
  }
  func.func @transform_1(%arg0: i32) -> (i32, i32) {
    %c0_i32 = arith.constant 0 : i32
    %c0_i32_0 = arith.constant 0 : i32
    %c0_i32_1 = arith.constant 0 : i32
    return %c0_i32, %c0_i32_0 : i32, i32
  }
  func.func @transform_2(%arg0: i32) -> (i32, i32) {
    %c0_i32 = arith.constant 0 : i32
    %c0_i32_0 = arith.constant 0 : i32
    %c0_i32_1 = arith.constant 0 : i32
    return %c0_i32, %c0_i32_0 : i32, i32
  }
  func.func @transform_3(%arg0: i32) -> (i32, i32) {
    %c0_i32 = arith.constant 0 : i32
    %c0_i32_0 = arith.constant 0 : i32
    %c0_i32_1 = arith.constant 0 : i32
    return %c0_i32, %c0_i32_0 : i32, i32
  }
  func.func @transform_4(%arg0: i32) -> (i32, i32) {
    %c0_i32 = arith.constant 0 : i32
    %c0_i32_0 = arith.constant 0 : i32
    %c0_i32_1 = arith.constant 0 : i32
    return %c0_i32, %c0_i32_0 : i32, i32
  }
  func.func @transform_5(%arg0: i32) -> (i32, i32) {
    %c0_i32 = arith.constant 0 : i32
    %c0_i32_0 = arith.constant 0 : i32
    return %arg0, %c0_i32 : i32, i32
  }
}

module attributes {stable_mosaic.version = 11 : i64} {
  func.func @_convT_kernel(%arg0: i32, %arg1: memref<8x36xbf16, #tpu.memory_space<vmem>>, %arg2: memref<36x256xbf16, #tpu.memory_space<vmem>>, %arg3: memref<1x256xf32, #tpu.memory_space<vmem>>, %arg4: memref<1x64xf32, #tpu.memory_space<vmem>>, %arg5: memref<1x64xf32, #tpu.memory_space<vmem>>, %arg6: memref<8x256xbf16, #tpu.memory_space<vmem>>) attributes {dimension_semantics = [#tpu.dimension_semantics<parallel>], iteration_bounds = array<i64: 1>, scalar_prefetch = 0 : i64, scratch_operands = 0 : i64, tpu.core_type = #tpu.core_type<tc>, window_params = [{transform_indices = @transform_0, window_bounds = array<i64: 8, 36>}, {pipeline_mode = #tpu.pipeline_mode<synchronous>, transform_indices = @transform_1, window_bounds = array<i64: 36, 256>}, {pipeline_mode = #tpu.pipeline_mode<synchronous>, transform_indices = @transform_2, window_bounds = array<i64: 1, 256>}, {pipeline_mode = #tpu.pipeline_mode<synchronous>, transform_indices = @transform_3, window_bounds = array<i64: 1, 64>}, {pipeline_mode = #tpu.pipeline_mode<synchronous>, transform_indices = @transform_4, window_bounds = array<i64: 1, 64>}, {transform_indices = @transform_5, window_bounds = array<i64: 8, 256>}]} {
    %c0 = arith.constant 0 : index
    %c0_0 = arith.constant 0 : index
    %0 = vector.load %arg1[%c0, %c0_0] : memref<8x36xbf16, #tpu.memory_space<vmem>>, vector<8x36xbf16>
    %c0_1 = arith.constant 0 : index
    %c0_2 = arith.constant 0 : index
    %1 = vector.load %arg2[%c0_1, %c0_2] : memref<36x256xbf16, #tpu.memory_space<vmem>>, vector<36x256xbf16>
    %cst = arith.constant dense<0.000000e+00> : vector<8x256xf32>
    %2 = tpu.matmul %0, %1, %cst {dimension_numbers = #tpu.dot_dimension_numbers<[1], [0], [0], [1], [0, 0, 1, 1], [], []>} : vector<8x36xbf16>, vector<36x256xbf16>, vector<8x256xf32> -> vector<8x256xf32>
    %c0_3 = arith.constant 0 : index
    %c0_4 = arith.constant 0 : index
    %3 = vector.load %arg3[%c0_3, %c0_4] : memref<1x256xf32, #tpu.memory_space<vmem>>, vector<1x256xf32>
    %4 = vector.broadcast %3 : vector<1x256xf32> to vector<8x256xf32>
    %5 = arith.addf %2, %4 : vector<8x256xf32>
    %6 = vector.extract_strided_slice %5 {offsets = [0, 0], sizes = [8, 64], strides = [1, 1]} : vector<8x256xf32> to vector<8x64xf32>
    %cst_5 = arith.constant dense<0.000000e+00> : vector<8xf32>
    %7 = vector.multi_reduction <add>, %6, %cst_5 [1] : vector<8x64xf32> to vector<8xf32>
    %8 = vector.shape_cast %7 : vector<8xf32> to vector<8x1xf32>
    %cst_6 = arith.constant 6.400000e+01 : f32
    %9 = vector.broadcast %cst_6 : f32 to vector<8x1xf32>
    %10 = arith.divf %8, %9 : vector<8x1xf32>
    %11 = vector.broadcast %10 : vector<8x1xf32> to vector<8x64xf32>
    %12 = arith.subf %6, %11 : vector<8x64xf32>
    %13 = arith.mulf %12, %12 : vector<8x64xf32>
    %cst_7 = arith.constant dense<0.000000e+00> : vector<8xf32>
    %14 = vector.multi_reduction <add>, %13, %cst_7 [1] : vector<8x64xf32> to vector<8xf32>
    %15 = vector.shape_cast %14 : vector<8xf32> to vector<8x1xf32>
    %cst_8 = arith.constant 6.400000e+01 : f32
    %16 = vector.broadcast %cst_8 : f32 to vector<8x1xf32>
    %17 = arith.divf %15, %16 : vector<8x1xf32>
    %18 = vector.broadcast %10 : vector<8x1xf32> to vector<8x64xf32>
    %19 = arith.subf %6, %18 : vector<8x64xf32>
    %cst_9 = arith.constant 9.99999974E-6 : f32
    %20 = vector.broadcast %cst_9 : f32 to vector<8x1xf32>
    %21 = arith.addf %17, %20 : vector<8x1xf32>
    %22 = math.rsqrt %21 : vector<8x1xf32>
    %23 = vector.broadcast %22 : vector<8x1xf32> to vector<8x64xf32>
    %24 = arith.mulf %19, %23 : vector<8x64xf32>
    %c0_10 = arith.constant 0 : index
    %c0_11 = arith.constant 0 : index
    %25 = vector.load %arg4[%c0_10, %c0_11] : memref<1x64xf32, #tpu.memory_space<vmem>>, vector<1x64xf32>
    %26 = vector.broadcast %25 : vector<1x64xf32> to vector<8x64xf32>
    %27 = arith.mulf %24, %26 : vector<8x64xf32>
    %c0_12 = arith.constant 0 : index
    %c0_13 = arith.constant 0 : index
    %28 = vector.load %arg5[%c0_12, %c0_13] : memref<1x64xf32, #tpu.memory_space<vmem>>, vector<1x64xf32>
    %29 = vector.broadcast %28 : vector<1x64xf32> to vector<8x64xf32>
    %30 = arith.addf %27, %29 : vector<8x64xf32>
    %31 = arith.negf %30 : vector<8x64xf32>
    %32 = math.exp %31 : vector<8x64xf32>
    %cst_14 = arith.constant 1.000000e+00 : f32
    %33 = vector.broadcast %cst_14 : f32 to vector<8x64xf32>
    %34 = arith.addf %33, %32 : vector<8x64xf32>
    %35 = arith.divf %33, %34 : vector<8x64xf32>
    %36 = arith.mulf %30, %35 : vector<8x64xf32>
    %37 = arith.truncf %36 : vector<8x64xf32> to vector<8x64xbf16>
    %c0_15 = arith.constant 0 : index
    %c0_16 = arith.constant 0 : index
    %38 = vector.load %arg6[%c0_15, %c0_16] : memref<8x256xbf16, #tpu.memory_space<vmem>>, vector<8x64xbf16>
    tpu.vector_store %arg6[%c0_15, %c0_16], %37 {strides = array<i32>} : memref<8x256xbf16, #tpu.memory_space<vmem>>, vector<8x64xbf16>,
    %39 = vector.extract_strided_slice %5 {offsets = [0, 64], sizes = [8, 64], strides = [1, 1]} : vector<8x256xf32> to vector<8x64xf32>
    %cst_17 = arith.constant dense<0.000000e+00> : vector<8xf32>
    %40 = vector.multi_reduction <add>, %39, %cst_17 [1] : vector<8x64xf32> to vector<8xf32>
    %41 = vector.shape_cast %40 : vector<8xf32> to vector<8x1xf32>
    %cst_18 = arith.constant 6.400000e+01 : f32
    %42 = vector.broadcast %cst_18 : f32 to vector<8x1xf32>
    %43 = arith.divf %41, %42 : vector<8x1xf32>
    %44 = vector.broadcast %43 : vector<8x1xf32> to vector<8x64xf32>
    %45 = arith.subf %39, %44 : vector<8x64xf32>
    %46 = arith.mulf %45, %45 : vector<8x64xf32>
    %cst_19 = arith.constant dense<0.000000e+00> : vector<8xf32>
    %47 = vector.multi_reduction <add>, %46, %cst_19 [1] : vector<8x64xf32> to vector<8xf32>
    %48 = vector.shape_cast %47 : vector<8xf32> to vector<8x1xf32>
    %cst_20 = arith.constant 6.400000e+01 : f32
    %49 = vector.broadcast %cst_20 : f32 to vector<8x1xf32>
    %50 = arith.divf %48, %49 : vector<8x1xf32>
    %51 = vector.broadcast %43 : vector<8x1xf32> to vector<8x64xf32>
    %52 = arith.subf %39, %51 : vector<8x64xf32>
    %cst_21 = arith.constant 9.99999974E-6 : f32
    %53 = vector.broadcast %cst_21 : f32 to vector<8x1xf32>
    %54 = arith.addf %50, %53 : vector<8x1xf32>
    %55 = math.rsqrt %54 : vector<8x1xf32>
    %56 = vector.broadcast %55 : vector<8x1xf32> to vector<8x64xf32>
    %57 = arith.mulf %52, %56 : vector<8x64xf32>
    %c0_22 = arith.constant 0 : index
    %c0_23 = arith.constant 0 : index
    %58 = vector.load %arg4[%c0_22, %c0_23] : memref<1x64xf32, #tpu.memory_space<vmem>>, vector<1x64xf32>
    %59 = vector.broadcast %58 : vector<1x64xf32> to vector<8x64xf32>
    %60 = arith.mulf %57, %59 : vector<8x64xf32>
    %c0_24 = arith.constant 0 : index
    %c0_25 = arith.constant 0 : index
    %61 = vector.load %arg5[%c0_24, %c0_25] : memref<1x64xf32, #tpu.memory_space<vmem>>, vector<1x64xf32>
    %62 = vector.broadcast %61 : vector<1x64xf32> to vector<8x64xf32>
    %63 = arith.addf %60, %62 : vector<8x64xf32>
    %64 = arith.negf %63 : vector<8x64xf32>
    %65 = math.exp %64 : vector<8x64xf32>
    %cst_26 = arith.constant 1.000000e+00 : f32
    %66 = vector.broadcast %cst_26 : f32 to vector<8x64xf32>
    %67 = arith.addf %66, %65 : vector<8x64xf32>
    %68 = arith.divf %66, %67 : vector<8x64xf32>
    %69 = arith.mulf %63, %68 : vector<8x64xf32>
    %70 = arith.truncf %69 : vector<8x64xf32> to vector<8x64xbf16>
    %c0_27 = arith.constant 0 : index
    %c64 = arith.constant 64 : index
    %71 = vector.load %arg6[%c0_27, %c64] : memref<8x256xbf16, #tpu.memory_space<vmem>>, vector<8x64xbf16>
    tpu.vector_store %arg6[%c0_27, %c64], %70 {strides = array<i32>} : memref<8x256xbf16, #tpu.memory_space<vmem>>, vector<8x64xbf16>,
    %72 = vector.extract_strided_slice %5 {offsets = [0, 128], sizes = [8, 64], strides = [1, 1]} : vector<8x256xf32> to vector<8x64xf32>
    %cst_28 = arith.constant dense<0.000000e+00> : vector<8xf32>
    %73 = vector.multi_reduction <add>, %72, %cst_28 [1] : vector<8x64xf32> to vector<8xf32>
    %74 = vector.shape_cast %73 : vector<8xf32> to vector<8x1xf32>
    %cst_29 = arith.constant 6.400000e+01 : f32
    %75 = vector.broadcast %cst_29 : f32 to vector<8x1xf32>
    %76 = arith.divf %74, %75 : vector<8x1xf32>
    %77 = vector.broadcast %76 : vector<8x1xf32> to vector<8x64xf32>
    %78 = arith.subf %72, %77 : vector<8x64xf32>
    %79 = arith.mulf %78, %78 : vector<8x64xf32>
    %cst_30 = arith.constant dense<0.000000e+00> : vector<8xf32>
    %80 = vector.multi_reduction <add>, %79, %cst_30 [1] : vector<8x64xf32> to vector<8xf32>
    %81 = vector.shape_cast %80 : vector<8xf32> to vector<8x1xf32>
    %cst_31 = arith.constant 6.400000e+01 : f32
    %82 = vector.broadcast %cst_31 : f32 to vector<8x1xf32>
    %83 = arith.divf %81, %82 : vector<8x1xf32>
    %84 = vector.broadcast %76 : vector<8x1xf32> to vector<8x64xf32>
    %85 = arith.subf %72, %84 : vector<8x64xf32>
    %cst_32 = arith.constant 9.99999974E-6 : f32
    %86 = vector.broadcast %cst_32 : f32 to vector<8x1xf32>
    %87 = arith.addf %83, %86 : vector<8x1xf32>
    %88 = math.rsqrt %87 : vector<8x1xf32>
    %89 = vector.broadcast %88 : vector<8x1xf32> to vector<8x64xf32>
    %90 = arith.mulf %85, %89 : vector<8x64xf32>
    %c0_33 = arith.constant 0 : index
    %c0_34 = arith.constant 0 : index
    %91 = vector.load %arg4[%c0_33, %c0_34] : memref<1x64xf32, #tpu.memory_space<vmem>>, vector<1x64xf32>
    %92 = vector.broadcast %91 : vector<1x64xf32> to vector<8x64xf32>
    %93 = arith.mulf %90, %92 : vector<8x64xf32>
    %c0_35 = arith.constant 0 : index
    %c0_36 = arith.constant 0 : index
    %94 = vector.load %arg5[%c0_35, %c0_36] : memref<1x64xf32, #tpu.memory_space<vmem>>, vector<1x64xf32>
    %95 = vector.broadcast %94 : vector<1x64xf32> to vector<8x64xf32>
    %96 = arith.addf %93, %95 : vector<8x64xf32>
    %97 = arith.negf %96 : vector<8x64xf32>
    %98 = math.exp %97 : vector<8x64xf32>
    %cst_37 = arith.constant 1.000000e+00 : f32
    %99 = vector.broadcast %cst_37 : f32 to vector<8x64xf32>
    %100 = arith.addf %99, %98 : vector<8x64xf32>
    %101 = arith.divf %99, %100 : vector<8x64xf32>
    %102 = arith.mulf %96, %101 : vector<8x64xf32>
    %103 = arith.truncf %102 : vector<8x64xf32> to vector<8x64xbf16>
    %c0_38 = arith.constant 0 : index
    %c128 = arith.constant 128 : index
    %104 = vector.load %arg6[%c0_38, %c128] : memref<8x256xbf16, #tpu.memory_space<vmem>>, vector<8x64xbf16>
    tpu.vector_store %arg6[%c0_38, %c128], %103 {strides = array<i32>} : memref<8x256xbf16, #tpu.memory_space<vmem>>, vector<8x64xbf16>,
    %105 = vector.extract_strided_slice %5 {offsets = [0, 192], sizes = [8, 64], strides = [1, 1]} : vector<8x256xf32> to vector<8x64xf32>
    %cst_39 = arith.constant dense<0.000000e+00> : vector<8xf32>
    %106 = vector.multi_reduction <add>, %105, %cst_39 [1] : vector<8x64xf32> to vector<8xf32>
    %107 = vector.shape_cast %106 : vector<8xf32> to vector<8x1xf32>
    %cst_40 = arith.constant 6.400000e+01 : f32
    %108 = vector.broadcast %cst_40 : f32 to vector<8x1xf32>
    %109 = arith.divf %107, %108 : vector<8x1xf32>
    %110 = vector.broadcast %109 : vector<8x1xf32> to vector<8x64xf32>
    %111 = arith.subf %105, %110 : vector<8x64xf32>
    %112 = arith.mulf %111, %111 : vector<8x64xf32>
    %cst_41 = arith.constant dense<0.000000e+00> : vector<8xf32>
    %113 = vector.multi_reduction <add>, %112, %cst_41 [1] : vector<8x64xf32> to vector<8xf32>
    %114 = vector.shape_cast %113 : vector<8xf32> to vector<8x1xf32>
    %cst_42 = arith.constant 6.400000e+01 : f32
    %115 = vector.broadcast %cst_42 : f32 to vector<8x1xf32>
    %116 = arith.divf %114, %115 : vector<8x1xf32>
    %117 = vector.broadcast %109 : vector<8x1xf32> to vector<8x64xf32>
    %118 = arith.subf %105, %117 : vector<8x64xf32>
    %cst_43 = arith.constant 9.99999974E-6 : f32
    %119 = vector.broadcast %cst_43 : f32 to vector<8x1xf32>
    %120 = arith.addf %116, %119 : vector<8x1xf32>
    %121 = math.rsqrt %120 : vector<8x1xf32>
    %122 = vector.broadcast %121 : vector<8x1xf32> to vector<8x64xf32>
    %123 = arith.mulf %118, %122 : vector<8x64xf32>
    %c0_44 = arith.constant 0 : index
    %c0_45 = arith.constant 0 : index
    %124 = vector.load %arg4[%c0_44, %c0_45] : memref<1x64xf32, #tpu.memory_space<vmem>>, vector<1x64xf32>
    %125 = vector.broadcast %124 : vector<1x64xf32> to vector<8x64xf32>
    %126 = arith.mulf %123, %125 : vector<8x64xf32>
    %c0_46 = arith.constant 0 : index
    %c0_47 = arith.constant 0 : index
    %127 = vector.load %arg5[%c0_46, %c0_47] : memref<1x64xf32, #tpu.memory_space<vmem>>, vector<1x64xf32>
    %128 = vector.broadcast %127 : vector<1x64xf32> to vector<8x64xf32>
    %129 = arith.addf %126, %128 : vector<8x64xf32>
    %130 = arith.negf %129 : vector<8x64xf32>
    %131 = math.exp %130 : vector<8x64xf32>
    %cst_48 = arith.constant 1.000000e+00 : f32
    %132 = vector.broadcast %cst_48 : f32 to vector<8x64xf32>
    %133 = arith.addf %132, %131 : vector<8x64xf32>
    %134 = arith.divf %132, %133 : vector<8x64xf32>
    %135 = arith.mulf %129, %134 : vector<8x64xf32>
    %136 = arith.truncf %135 : vector<8x64xf32> to vector<8x64xbf16>
    %c0_49 = arith.constant 0 : index
    %c192 = arith.constant 192 : index
    %137 = vector.load %arg6[%c0_49, %c192] : memref<8x256xbf16, #tpu.memory_space<vmem>>, vector<8x64xbf16>
    tpu.vector_store %arg6[%c0_49, %c192], %136 {strides = array<i32>} : memref<8x256xbf16, #tpu.memory_space<vmem>>, vector<8x64xbf16>,
    return
  }
  func.func @transform_0(%arg0: i32) -> (i32, i32) {
    %c0_i32 = arith.constant 0 : i32
    %c0_i32_0 = arith.constant 0 : i32
    return %arg0, %c0_i32 : i32, i32
  }
  func.func @transform_1(%arg0: i32) -> (i32, i32) {
    %c0_i32 = arith.constant 0 : i32
    %c0_i32_0 = arith.constant 0 : i32
    %c0_i32_1 = arith.constant 0 : i32
    return %c0_i32, %c0_i32_0 : i32, i32
  }
  func.func @transform_2(%arg0: i32) -> (i32, i32) {
    %c0_i32 = arith.constant 0 : i32
    %c0_i32_0 = arith.constant 0 : i32
    %c0_i32_1 = arith.constant 0 : i32
    return %c0_i32, %c0_i32_0 : i32, i32
  }
  func.func @transform_3(%arg0: i32) -> (i32, i32) {
    %c0_i32 = arith.constant 0 : i32
    %c0_i32_0 = arith.constant 0 : i32
    %c0_i32_1 = arith.constant 0 : i32
    return %c0_i32, %c0_i32_0 : i32, i32
  }
  func.func @transform_4(%arg0: i32) -> (i32, i32) {
    %c0_i32 = arith.constant 0 : i32
    %c0_i32_0 = arith.constant 0 : i32
    %c0_i32_1 = arith.constant 0 : i32
    return %c0_i32, %c0_i32_0 : i32, i32
  }
  func.func @transform_5(%arg0: i32) -> (i32, i32) {
    %c0_i32 = arith.constant 0 : i32
    %c0_i32_0 = arith.constant 0 : i32
    return %arg0, %c0_i32 : i32, i32
  }
}

module attributes {stable_mosaic.version = 11 : i64} {
  func.func @_convT_kernel(%arg0: i32, %arg1: memref<16x576xbf16, #tpu.memory_space<vmem>>, %arg2: memref<576x128xbf16, #tpu.memory_space<vmem>>, %arg3: memref<1x128xf32, #tpu.memory_space<vmem>>, %arg4: memref<1x32xf32, #tpu.memory_space<vmem>>, %arg5: memref<1x32xf32, #tpu.memory_space<vmem>>, %arg6: memref<16x128xbf16, #tpu.memory_space<vmem>>) attributes {dimension_semantics = [#tpu.dimension_semantics<parallel>], iteration_bounds = array<i64: 2>, scalar_prefetch = 0 : i64, scratch_operands = 0 : i64, tpu.core_type = #tpu.core_type<tc>, window_params = [{transform_indices = @transform_0, window_bounds = array<i64: 16, 576>}, {pipeline_mode = #tpu.pipeline_mode<synchronous>, transform_indices = @transform_1, window_bounds = array<i64: 576, 128>}, {pipeline_mode = #tpu.pipeline_mode<synchronous>, transform_indices = @transform_2, window_bounds = array<i64: 1, 128>}, {pipeline_mode = #tpu.pipeline_mode<synchronous>, transform_indices = @transform_3, window_bounds = array<i64: 1, 32>}, {pipeline_mode = #tpu.pipeline_mode<synchronous>, transform_indices = @transform_4, window_bounds = array<i64: 1, 32>}, {transform_indices = @transform_5, window_bounds = array<i64: 16, 128>}]} {
    %c0 = arith.constant 0 : index
    %c0_0 = arith.constant 0 : index
    %0 = vector.load %arg1[%c0, %c0_0] : memref<16x576xbf16, #tpu.memory_space<vmem>>, vector<16x576xbf16>
    %c0_1 = arith.constant 0 : index
    %c0_2 = arith.constant 0 : index
    %1 = vector.load %arg2[%c0_1, %c0_2] : memref<576x128xbf16, #tpu.memory_space<vmem>>, vector<576x128xbf16>
    %cst = arith.constant dense<0.000000e+00> : vector<16x128xf32>
    %2 = tpu.matmul %0, %1, %cst {dimension_numbers = #tpu.dot_dimension_numbers<[1], [0], [0], [1], [0, 0, 1, 1], [], []>} : vector<16x576xbf16>, vector<576x128xbf16>, vector<16x128xf32> -> vector<16x128xf32>
    %c0_3 = arith.constant 0 : index
    %c0_4 = arith.constant 0 : index
    %3 = vector.load %arg3[%c0_3, %c0_4] : memref<1x128xf32, #tpu.memory_space<vmem>>, vector<1x128xf32>
    %4 = vector.broadcast %3 : vector<1x128xf32> to vector<16x128xf32>
    %5 = arith.addf %2, %4 : vector<16x128xf32>
    %6 = vector.extract_strided_slice %5 {offsets = [0, 0], sizes = [16, 32], strides = [1, 1]} : vector<16x128xf32> to vector<16x32xf32>
    %cst_5 = arith.constant dense<0.000000e+00> : vector<16xf32>
    %7 = vector.multi_reduction <add>, %6, %cst_5 [1] : vector<16x32xf32> to vector<16xf32>
    %8 = vector.shape_cast %7 : vector<16xf32> to vector<16x1xf32>
    %cst_6 = arith.constant 3.200000e+01 : f32
    %9 = vector.broadcast %cst_6 : f32 to vector<16x1xf32>
    %10 = arith.divf %8, %9 : vector<16x1xf32>
    %11 = vector.broadcast %10 : vector<16x1xf32> to vector<16x32xf32>
    %12 = arith.subf %6, %11 : vector<16x32xf32>
    %13 = arith.mulf %12, %12 : vector<16x32xf32>
    %cst_7 = arith.constant dense<0.000000e+00> : vector<16xf32>
    %14 = vector.multi_reduction <add>, %13, %cst_7 [1] : vector<16x32xf32> to vector<16xf32>
    %15 = vector.shape_cast %14 : vector<16xf32> to vector<16x1xf32>
    %cst_8 = arith.constant 3.200000e+01 : f32
    %16 = vector.broadcast %cst_8 : f32 to vector<16x1xf32>
    %17 = arith.divf %15, %16 : vector<16x1xf32>
    %18 = vector.broadcast %10 : vector<16x1xf32> to vector<16x32xf32>
    %19 = arith.subf %6, %18 : vector<16x32xf32>
    %cst_9 = arith.constant 9.99999974E-6 : f32
    %20 = vector.broadcast %cst_9 : f32 to vector<16x1xf32>
    %21 = arith.addf %17, %20 : vector<16x1xf32>
    %22 = math.rsqrt %21 : vector<16x1xf32>
    %23 = vector.broadcast %22 : vector<16x1xf32> to vector<16x32xf32>
    %24 = arith.mulf %19, %23 : vector<16x32xf32>
    %c0_10 = arith.constant 0 : index
    %c0_11 = arith.constant 0 : index
    %25 = vector.load %arg4[%c0_10, %c0_11] : memref<1x32xf32, #tpu.memory_space<vmem>>, vector<1x32xf32>
    %26 = vector.broadcast %25 : vector<1x32xf32> to vector<16x32xf32>
    %27 = arith.mulf %24, %26 : vector<16x32xf32>
    %c0_12 = arith.constant 0 : index
    %c0_13 = arith.constant 0 : index
    %28 = vector.load %arg5[%c0_12, %c0_13] : memref<1x32xf32, #tpu.memory_space<vmem>>, vector<1x32xf32>
    %29 = vector.broadcast %28 : vector<1x32xf32> to vector<16x32xf32>
    %30 = arith.addf %27, %29 : vector<16x32xf32>
    %31 = arith.negf %30 : vector<16x32xf32>
    %32 = math.exp %31 : vector<16x32xf32>
    %cst_14 = arith.constant 1.000000e+00 : f32
    %33 = vector.broadcast %cst_14 : f32 to vector<16x32xf32>
    %34 = arith.addf %33, %32 : vector<16x32xf32>
    %35 = arith.divf %33, %34 : vector<16x32xf32>
    %36 = arith.mulf %30, %35 : vector<16x32xf32>
    %37 = arith.truncf %36 : vector<16x32xf32> to vector<16x32xbf16>
    %c0_15 = arith.constant 0 : index
    %c0_16 = arith.constant 0 : index
    %38 = vector.load %arg6[%c0_15, %c0_16] : memref<16x128xbf16, #tpu.memory_space<vmem>>, vector<16x32xbf16>
    tpu.vector_store %arg6[%c0_15, %c0_16], %37 {strides = array<i32>} : memref<16x128xbf16, #tpu.memory_space<vmem>>, vector<16x32xbf16>,
    %39 = vector.extract_strided_slice %5 {offsets = [0, 32], sizes = [16, 32], strides = [1, 1]} : vector<16x128xf32> to vector<16x32xf32>
    %cst_17 = arith.constant dense<0.000000e+00> : vector<16xf32>
    %40 = vector.multi_reduction <add>, %39, %cst_17 [1] : vector<16x32xf32> to vector<16xf32>
    %41 = vector.shape_cast %40 : vector<16xf32> to vector<16x1xf32>
    %cst_18 = arith.constant 3.200000e+01 : f32
    %42 = vector.broadcast %cst_18 : f32 to vector<16x1xf32>
    %43 = arith.divf %41, %42 : vector<16x1xf32>
    %44 = vector.broadcast %43 : vector<16x1xf32> to vector<16x32xf32>
    %45 = arith.subf %39, %44 : vector<16x32xf32>
    %46 = arith.mulf %45, %45 : vector<16x32xf32>
    %cst_19 = arith.constant dense<0.000000e+00> : vector<16xf32>
    %47 = vector.multi_reduction <add>, %46, %cst_19 [1] : vector<16x32xf32> to vector<16xf32>
    %48 = vector.shape_cast %47 : vector<16xf32> to vector<16x1xf32>
    %cst_20 = arith.constant 3.200000e+01 : f32
    %49 = vector.broadcast %cst_20 : f32 to vector<16x1xf32>
    %50 = arith.divf %48, %49 : vector<16x1xf32>
    %51 = vector.broadcast %43 : vector<16x1xf32> to vector<16x32xf32>
    %52 = arith.subf %39, %51 : vector<16x32xf32>
    %cst_21 = arith.constant 9.99999974E-6 : f32
    %53 = vector.broadcast %cst_21 : f32 to vector<16x1xf32>
    %54 = arith.addf %50, %53 : vector<16x1xf32>
    %55 = math.rsqrt %54 : vector<16x1xf32>
    %56 = vector.broadcast %55 : vector<16x1xf32> to vector<16x32xf32>
    %57 = arith.mulf %52, %56 : vector<16x32xf32>
    %c0_22 = arith.constant 0 : index
    %c0_23 = arith.constant 0 : index
    %58 = vector.load %arg4[%c0_22, %c0_23] : memref<1x32xf32, #tpu.memory_space<vmem>>, vector<1x32xf32>
    %59 = vector.broadcast %58 : vector<1x32xf32> to vector<16x32xf32>
    %60 = arith.mulf %57, %59 : vector<16x32xf32>
    %c0_24 = arith.constant 0 : index
    %c0_25 = arith.constant 0 : index
    %61 = vector.load %arg5[%c0_24, %c0_25] : memref<1x32xf32, #tpu.memory_space<vmem>>, vector<1x32xf32>
    %62 = vector.broadcast %61 : vector<1x32xf32> to vector<16x32xf32>
    %63 = arith.addf %60, %62 : vector<16x32xf32>
    %64 = arith.negf %63 : vector<16x32xf32>
    %65 = math.exp %64 : vector<16x32xf32>
    %cst_26 = arith.constant 1.000000e+00 : f32
    %66 = vector.broadcast %cst_26 : f32 to vector<16x32xf32>
    %67 = arith.addf %66, %65 : vector<16x32xf32>
    %68 = arith.divf %66, %67 : vector<16x32xf32>
    %69 = arith.mulf %63, %68 : vector<16x32xf32>
    %70 = arith.truncf %69 : vector<16x32xf32> to vector<16x32xbf16>
    %c0_27 = arith.constant 0 : index
    %c32 = arith.constant 32 : index
    %71 = vector.load %arg6[%c0_27, %c32] : memref<16x128xbf16, #tpu.memory_space<vmem>>, vector<16x32xbf16>
    tpu.vector_store %arg6[%c0_27, %c32], %70 {strides = array<i32>} : memref<16x128xbf16, #tpu.memory_space<vmem>>, vector<16x32xbf16>,
    %72 = vector.extract_strided_slice %5 {offsets = [0, 64], sizes = [16, 32], strides = [1, 1]} : vector<16x128xf32> to vector<16x32xf32>
    %cst_28 = arith.constant dense<0.000000e+00> : vector<16xf32>
    %73 = vector.multi_reduction <add>, %72, %cst_28 [1] : vector<16x32xf32> to vector<16xf32>
    %74 = vector.shape_cast %73 : vector<16xf32> to vector<16x1xf32>
    %cst_29 = arith.constant 3.200000e+01 : f32
    %75 = vector.broadcast %cst_29 : f32 to vector<16x1xf32>
    %76 = arith.divf %74, %75 : vector<16x1xf32>
    %77 = vector.broadcast %76 : vector<16x1xf32> to vector<16x32xf32>
    %78 = arith.subf %72, %77 : vector<16x32xf32>
    %79 = arith.mulf %78, %78 : vector<16x32xf32>
    %cst_30 = arith.constant dense<0.000000e+00> : vector<16xf32>
    %80 = vector.multi_reduction <add>, %79, %cst_30 [1] : vector<16x32xf32> to vector<16xf32>
    %81 = vector.shape_cast %80 : vector<16xf32> to vector<16x1xf32>
    %cst_31 = arith.constant 3.200000e+01 : f32
    %82 = vector.broadcast %cst_31 : f32 to vector<16x1xf32>
    %83 = arith.divf %81, %82 : vector<16x1xf32>
    %84 = vector.broadcast %76 : vector<16x1xf32> to vector<16x32xf32>
    %85 = arith.subf %72, %84 : vector<16x32xf32>
    %cst_32 = arith.constant 9.99999974E-6 : f32
    %86 = vector.broadcast %cst_32 : f32 to vector<16x1xf32>
    %87 = arith.addf %83, %86 : vector<16x1xf32>
    %88 = math.rsqrt %87 : vector<16x1xf32>
    %89 = vector.broadcast %88 : vector<16x1xf32> to vector<16x32xf32>
    %90 = arith.mulf %85, %89 : vector<16x32xf32>
    %c0_33 = arith.constant 0 : index
    %c0_34 = arith.constant 0 : index
    %91 = vector.load %arg4[%c0_33, %c0_34] : memref<1x32xf32, #tpu.memory_space<vmem>>, vector<1x32xf32>
    %92 = vector.broadcast %91 : vector<1x32xf32> to vector<16x32xf32>
    %93 = arith.mulf %90, %92 : vector<16x32xf32>
    %c0_35 = arith.constant 0 : index
    %c0_36 = arith.constant 0 : index
    %94 = vector.load %arg5[%c0_35, %c0_36] : memref<1x32xf32, #tpu.memory_space<vmem>>, vector<1x32xf32>
    %95 = vector.broadcast %94 : vector<1x32xf32> to vector<16x32xf32>
    %96 = arith.addf %93, %95 : vector<16x32xf32>
    %97 = arith.negf %96 : vector<16x32xf32>
    %98 = math.exp %97 : vector<16x32xf32>
    %cst_37 = arith.constant 1.000000e+00 : f32
    %99 = vector.broadcast %cst_37 : f32 to vector<16x32xf32>
    %100 = arith.addf %99, %98 : vector<16x32xf32>
    %101 = arith.divf %99, %100 : vector<16x32xf32>
    %102 = arith.mulf %96, %101 : vector<16x32xf32>
    %103 = arith.truncf %102 : vector<16x32xf32> to vector<16x32xbf16>
    %c0_38 = arith.constant 0 : index
    %c64 = arith.constant 64 : index
    %104 = vector.load %arg6[%c0_38, %c64] : memref<16x128xbf16, #tpu.memory_space<vmem>>, vector<16x32xbf16>
    tpu.vector_store %arg6[%c0_38, %c64], %103 {strides = array<i32>} : memref<16x128xbf16, #tpu.memory_space<vmem>>, vector<16x32xbf16>,
    %105 = vector.extract_strided_slice %5 {offsets = [0, 96], sizes = [16, 32], strides = [1, 1]} : vector<16x128xf32> to vector<16x32xf32>
    %cst_39 = arith.constant dense<0.000000e+00> : vector<16xf32>
    %106 = vector.multi_reduction <add>, %105, %cst_39 [1] : vector<16x32xf32> to vector<16xf32>
    %107 = vector.shape_cast %106 : vector<16xf32> to vector<16x1xf32>
    %cst_40 = arith.constant 3.200000e+01 : f32
    %108 = vector.broadcast %cst_40 : f32 to vector<16x1xf32>
    %109 = arith.divf %107, %108 : vector<16x1xf32>
    %110 = vector.broadcast %109 : vector<16x1xf32> to vector<16x32xf32>
    %111 = arith.subf %105, %110 : vector<16x32xf32>
    %112 = arith.mulf %111, %111 : vector<16x32xf32>
    %cst_41 = arith.constant dense<0.000000e+00> : vector<16xf32>
    %113 = vector.multi_reduction <add>, %112, %cst_41 [1] : vector<16x32xf32> to vector<16xf32>
    %114 = vector.shape_cast %113 : vector<16xf32> to vector<16x1xf32>
    %cst_42 = arith.constant 3.200000e+01 : f32
    %115 = vector.broadcast %cst_42 : f32 to vector<16x1xf32>
    %116 = arith.divf %114, %115 : vector<16x1xf32>
    %117 = vector.broadcast %109 : vector<16x1xf32> to vector<16x32xf32>
    %118 = arith.subf %105, %117 : vector<16x32xf32>
    %cst_43 = arith.constant 9.99999974E-6 : f32
    %119 = vector.broadcast %cst_43 : f32 to vector<16x1xf32>
    %120 = arith.addf %116, %119 : vector<16x1xf32>
    %121 = math.rsqrt %120 : vector<16x1xf32>
    %122 = vector.broadcast %121 : vector<16x1xf32> to vector<16x32xf32>
    %123 = arith.mulf %118, %122 : vector<16x32xf32>
    %c0_44 = arith.constant 0 : index
    %c0_45 = arith.constant 0 : index
    %124 = vector.load %arg4[%c0_44, %c0_45] : memref<1x32xf32, #tpu.memory_space<vmem>>, vector<1x32xf32>
    %125 = vector.broadcast %124 : vector<1x32xf32> to vector<16x32xf32>
    %126 = arith.mulf %123, %125 : vector<16x32xf32>
    %c0_46 = arith.constant 0 : index
    %c0_47 = arith.constant 0 : index
    %127 = vector.load %arg5[%c0_46, %c0_47] : memref<1x32xf32, #tpu.memory_space<vmem>>, vector<1x32xf32>
    %128 = vector.broadcast %127 : vector<1x32xf32> to vector<16x32xf32>
    %129 = arith.addf %126, %128 : vector<16x32xf32>
    %130 = arith.negf %129 : vector<16x32xf32>
    %131 = math.exp %130 : vector<16x32xf32>
    %cst_48 = arith.constant 1.000000e+00 : f32
    %132 = vector.broadcast %cst_48 : f32 to vector<16x32xf32>
    %133 = arith.addf %132, %131 : vector<16x32xf32>
    %134 = arith.divf %132, %133 : vector<16x32xf32>
    %135 = arith.mulf %129, %134 : vector<16x32xf32>
    %136 = arith.truncf %135 : vector<16x32xf32> to vector<16x32xbf16>
    %c0_49 = arith.constant 0 : index
    %c96 = arith.constant 96 : index
    %137 = vector.load %arg6[%c0_49, %c96] : memref<16x128xbf16, #tpu.memory_space<vmem>>, vector<16x32xbf16>
    tpu.vector_store %arg6[%c0_49, %c96], %136 {strides = array<i32>} : memref<16x128xbf16, #tpu.memory_space<vmem>>, vector<16x32xbf16>,
    return
  }
  func.func @transform_0(%arg0: i32) -> (i32, i32) {
    %c0_i32 = arith.constant 0 : i32
    %c0_i32_0 = arith.constant 0 : i32
    return %arg0, %c0_i32 : i32, i32
  }
  func.func @transform_1(%arg0: i32) -> (i32, i32) {
    %c0_i32 = arith.constant 0 : i32
    %c0_i32_0 = arith.constant 0 : i32
    %c0_i32_1 = arith.constant 0 : i32
    return %c0_i32, %c0_i32_0 : i32, i32
  }
  func.func @transform_2(%arg0: i32) -> (i32, i32) {
    %c0_i32 = arith.constant 0 : i32
    %c0_i32_0 = arith.constant 0 : i32
    %c0_i32_1 = arith.constant 0 : i32
    return %c0_i32, %c0_i32_0 : i32, i32
  }
  func.func @transform_3(%arg0: i32) -> (i32, i32) {
    %c0_i32 = arith.constant 0 : i32
    %c0_i32_0 = arith.constant 0 : i32
    %c0_i32_1 = arith.constant 0 : i32
    return %c0_i32, %c0_i32_0 : i32, i32
  }
  func.func @transform_4(%arg0: i32) -> (i32, i32) {
    %c0_i32 = arith.constant 0 : i32
    %c0_i32_0 = arith.constant 0 : i32
    %c0_i32_1 = arith.constant 0 : i32
    return %c0_i32, %c0_i32_0 : i32, i32
  }
  func.func @transform_5(%arg0: i32) -> (i32, i32) {
    %c0_i32 = arith.constant 0 : i32
    %c0_i32_0 = arith.constant 0 : i32
    return %arg0, %c0_i32 : i32, i32
  }
}

module attributes {stable_mosaic.version = 11 : i64} {
  func.func @_convT_kernel(%arg0: i32, %arg1: memref<64x288xbf16, #tpu.memory_space<vmem>>, %arg2: memref<288x128xbf16, #tpu.memory_space<vmem>>, %arg3: memref<1x128xf32, #tpu.memory_space<vmem>>, %arg4: memref<1x32xf32, #tpu.memory_space<vmem>>, %arg5: memref<1x32xf32, #tpu.memory_space<vmem>>, %arg6: memref<64x128xf32, #tpu.memory_space<vmem>>) attributes {dimension_semantics = [#tpu.dimension_semantics<parallel>], iteration_bounds = array<i64: 2>, scalar_prefetch = 0 : i64, scratch_operands = 0 : i64, tpu.core_type = #tpu.core_type<tc>, window_params = [{transform_indices = @transform_0, window_bounds = array<i64: 64, 288>}, {pipeline_mode = #tpu.pipeline_mode<synchronous>, transform_indices = @transform_1, window_bounds = array<i64: 288, 128>}, {pipeline_mode = #tpu.pipeline_mode<synchronous>, transform_indices = @transform_2, window_bounds = array<i64: 1, 128>}, {pipeline_mode = #tpu.pipeline_mode<synchronous>, transform_indices = @transform_3, window_bounds = array<i64: 1, 32>}, {pipeline_mode = #tpu.pipeline_mode<synchronous>, transform_indices = @transform_4, window_bounds = array<i64: 1, 32>}, {transform_indices = @transform_5, window_bounds = array<i64: 64, 128>}]} {
    %c0 = arith.constant 0 : index
    %c0_0 = arith.constant 0 : index
    %0 = vector.load %arg1[%c0, %c0_0] : memref<64x288xbf16, #tpu.memory_space<vmem>>, vector<64x288xbf16>
    %c0_1 = arith.constant 0 : index
    %c0_2 = arith.constant 0 : index
    %1 = vector.load %arg2[%c0_1, %c0_2] : memref<288x128xbf16, #tpu.memory_space<vmem>>, vector<288x128xbf16>
    %cst = arith.constant dense<0.000000e+00> : vector<64x128xf32>
    %2 = tpu.matmul %0, %1, %cst {dimension_numbers = #tpu.dot_dimension_numbers<[1], [0], [0], [1], [0, 0, 1, 1], [], []>} : vector<64x288xbf16>, vector<288x128xbf16>, vector<64x128xf32> -> vector<64x128xf32>
    %c0_3 = arith.constant 0 : index
    %c0_4 = arith.constant 0 : index
    %3 = vector.load %arg3[%c0_3, %c0_4] : memref<1x128xf32, #tpu.memory_space<vmem>>, vector<1x128xf32>
    %4 = vector.broadcast %3 : vector<1x128xf32> to vector<64x128xf32>
    %5 = arith.addf %2, %4 : vector<64x128xf32>
    %6 = arith.negf %5 : vector<64x128xf32>
    %7 = math.exp %6 : vector<64x128xf32>
    %cst_5 = arith.constant 1.000000e+00 : f32
    %8 = vector.broadcast %cst_5 : f32 to vector<64x128xf32>
    %9 = arith.addf %8, %7 : vector<64x128xf32>
    %10 = arith.divf %8, %9 : vector<64x128xf32>
    %c0_6 = arith.constant 0 : index
    %c0_7 = arith.constant 0 : index
    %11 = vector.load %arg6[%c0_6, %c0_7] : memref<64x128xf32, #tpu.memory_space<vmem>>, vector<64x128xf32>
    tpu.vector_store %arg6[%c0_6, %c0_7], %10 {strides = array<i32>} : memref<64x128xf32, #tpu.memory_space<vmem>>, vector<64x128xf32>,
    return
  }
  func.func @transform_0(%arg0: i32) -> (i32, i32) {
    %c0_i32 = arith.constant 0 : i32
    %c0_i32_0 = arith.constant 0 : i32
    return %arg0, %c0_i32 : i32, i32
  }
  func.func @transform_1(%arg0: i32) -> (i32, i32) {
    %c0_i32 = arith.constant 0 : i32
    %c0_i32_0 = arith.constant 0 : i32
    %c0_i32_1 = arith.constant 0 : i32
    return %c0_i32, %c0_i32_0 : i32, i32
  }
  func.func @transform_2(%arg0: i32) -> (i32, i32) {
    %c0_i32 = arith.constant 0 : i32
    %c0_i32_0 = arith.constant 0 : i32
    %c0_i32_1 = arith.constant 0 : i32
    return %c0_i32, %c0_i32_0 : i32, i32
  }
  func.func @transform_3(%arg0: i32) -> (i32, i32) {
    %c0_i32 = arith.constant 0 : i32
    %c0_i32_0 = arith.constant 0 : i32
    %c0_i32_1 = arith.constant 0 : i32
    return %c0_i32, %c0_i32_0 : i32, i32
  }
  func.func @transform_4(%arg0: i32) -> (i32, i32) {
    %c0_i32 = arith.constant 0 : i32
    %c0_i32_0 = arith.constant 0 : i32
    %c0_i32_1 = arith.constant 0 : i32
    return %c0_i32, %c0_i32_0 : i32, i32
  }
  func.func @transform_5(%arg0: i32) -> (i32, i32) {
    %c0_i32 = arith.constant 0 : i32
    %c0_i32_0 = arith.constant 0 : i32
    return %arg0, %c0_i32 : i32, i32
  }
}

</mosaic_0001>

<bundles_post_ra>
// kernel: decoder_forward.4
= control target key start
LH: loop header
LB: loop body
LE: loop exit
PB: predicated region body
PF: predicated region fallthrough
CT: control target
= control target key end

     0   :  { %v408_v1 = vmov 0   ;;  %vm68_vm0 = vcmask 1041408   ;;  %vm64_vm1 = vcmask 293888   ;;  %v29_v26 = vlaneseq  ;;  %s514_s1 = inlined_call_operand.vmem [shape: bf16[36,256], index: 1, kind: input, shape index: {}]   ;;  %s515_s0 = inlined_call_operand.vmem [shape: bf16[2,36], index: 0, kind: input, shape index: {}]   ;;  %s516_s3 = inlined_call_operand.vmem [shape: bf16[256,16], index: 3, kind: input, shape index: {}]   ;;  %s517_s2 = inlined_call_operand.vmem [shape: f32[1,256], index: 2, kind: input, shape index: {}]   ;;  %s518_s4 = inlined_call_operand.vmem [shape: f32[1,16], index: 4, kind: input, shape index: {}]   ;;  %s519_s5 = inlined_call_operand.vmem [shape: bf16[2,16], index: 5, kind: output, shape index: {}]  }
   0x1   :  { %v372_v0 = vld [vmem:[%s514_s1 + $0x4] ss:$8 sps:$4 sm:$0xff]   ;;  %107 = vmatprep.mubr.bf16.mxu0 %v408_v1  ;;  %v374_v2 = vld [vmem:[%s514_s1] ss:$8 sps:$4 sm:$0xff]   ;;  %v375_v3 = vld [vmem:[%s514_s1 + $0x14] ss:$8 sps:$4 sm:$0xff]  }
   0x2   :  { %75 = vmatprep.subr.bf16.mxu0 %v372_v0  ;;  %v26_v4 = vld [vmem:[%s514_s1 + $0x20] sm:$0x33]  ;;  %v377_v5 = vld [vmem:[%s514_s1 + $0x10] ss:$8 sps:$4 sm:$0xff]   ;;  %v382_v12 = vld [vmem:[%s516_s3 + $0x48] sm:$0xff]   ;;  %v30_v27 = vshrl.u32 %v29_v26, 7 }
   0x3   :  { %76 = vmatpush1.bf16.msra.mxu0 %v374_v2  ;;  %v326_v6 = vcombine.high %v26_v4, %v26_v4  ;;  %v325_v7 = vcombine.low %v26_v4, %v26_v4  ;;  %v21_v9 = vld [vmem:[%s515_s0] sm:$0x1]  ;;  %v383_v13 = vld [vmem:[%s516_s3 + $0x8] sm:$0xff]   ;;  %v384_v14 = vld [vmem:[%s516_s3 + $0x50] sm:$0xff]   ;;  %vm315_vm2 = vcmask 122880  }
   0x4   :  { %77 = vmatprep.subr.bf16.mxu0 %v375_v3  ;;  %v380_v10 = vld [vmem:[%s516_s3 + $0x40] sm:$0xff]   ;;  %v385_v15 = vld [vmem:[%s516_s3 + $0x10] sm:$0xff]   ;;  %v386_v16 = vld [vmem:[%s516_s3 + $0x58] sm:$0xff]   ;;  %v31_v28 = vsub.s32 0, %v30_v27  ;;  %v35_v30 = vsub.s32 1, %v30_v27 }
   0x5   :  { %v70_v8 = vsel %vm68_vm0, %v325_v7, 0  ;;  %v381_v11 = vld [vmem:[%s516_s3] sm:$0xff]   ;;  %349 = vmatprep.subr.bf16.mxu1 %v380_v10  ;;  %v387_v17 = vld [vmem:[%s516_s3 + $0x18] sm:$0xff]   ;;  %v390_v20 = vld [vmem:[%s516_s3 + $0x68] sm:$0xff]  }
   0x6   :  { %350 = vmatpush3.bf16.msra.mxu1 %v381_v11  ;;  %v388_v18 = vld [vmem:[%s516_s3 + $0x60] sm:$0xff]   ;;  %v391_v21 = vld [vmem:[%s516_s3 + $0x28] sm:$0xff]   ;;  %v392_v22 = vld [vmem:[%s516_s3 + $0x70] sm:$0xff]  }
   0x7   :  { %78 = vmatpush1.bf16.msra.mxu0 %v377_v5  ;;  %351 = vmatprep.subr.bf16.mxu1 %v382_v12  ;;  %v389_v19 = vld [vmem:[%s516_s3 + $0x20] sm:$0xff]   ;;  %v393_v23 = vld [vmem:[%s516_s3 + $0x30] sm:$0xff]   ;;  %v394_v24 = vld [vmem:[%s516_s3 + $0x78] sm:$0xff]  }
   0x8   :  { %327 = vmatprep.subr.msk.bf16.mxu0 %vm68_vm0, %v326_v6  ;;  %v395_v25 = vld [vmem:[%s516_s3 + $0x38] sm:$0xff]   ;;  %v27_v29 = vld [vmem:[%s517_s2] sm:$0x3] }
   0x9   :  { %v32_v31 = vrot.slane %v27_v29, %v31_v28  ;;  %v36_v32 = vrot.slane %v27_v29, %v35_v30  ;;  %v331_v52 = vld [vmem:[%s518_s4] ss:$0 sm:$0xff] }
   0xa   :  { %352 = vmatpush3.bf16.msra.mxu1 %v383_v13 }
   0xb   :  { %80 = vmatpush1.bf16.msra.mxu0 %v70_v8  ;;  %353 = vmatprep.subr.bf16.mxu1 %v384_v14 }
   0xe   :  { %328 = vmatmul.mubr.msk.bf16.vlgmr.msra.gmra.mrb[0].mxu0 %vm64_vm1, %v21_v9  ;;  %354 = vmatpush3.bf16.msra.mxu1 %v385_v15 }
   0xf   :  { %355 = vmatprep.subr.bf16.mxu1 %v386_v16 }
  0x12   :  { %356 = vmatpush3.bf16.msra.mxu1 %v387_v17 }
  0x13   :  { %357 = vmatprep.subr.bf16.mxu1 %v388_v18 }
  0x16   :  { %358 = vmatpush3.bf16.msra.mxu1 %v389_v19 }
  0x17   :  { %359 = vmatprep.subr.bf16.mxu1 %v390_v20 }
  0x1a   :  { %360 = vmatpush3.bf16.msra.mxu1 %v391_v21 }
  0x1b   :  { %361 = vmatprep.subr.bf16.mxu1 %v392_v22 }
  0x1e   :  { %362 = vmatpush3.bf16.msra.mxu1 %v393_v23 }
  0x1f   :  { %363 = vmatprep.subr.bf16.mxu1 %v394_v24 }
  0x22   :  { %364 = vmatpush3.bf16.msra.mxu1 %v395_v25 }
  0xe1   :  { %v109_v33 = vpop.f32.mrb[0].mxu0 }
  0xe2   :  { %v110_v34 = vadd.f32 %v109_v33, %v32_v31  ;;  %v111_v35 = vpop.f32.mrb[1].mxu0 }
  0xe3   :  { %v112_v36 = vadd.f32 %v111_v35, %v36_v32  ;;  %v113_v37 = vpop.f32.mrb[2].mxu0 }
  0xe4   :  { %v329_v38 = vmul.f32 -1.442695, %v110_v34  ;;  %v114_v39 = vpop.f32.mrb[3].mxu0 }
  0xe5   :  { %v330_v40 = vmul.f32 -1.442695, %v112_v36 }
  0xe6   :  { %396 = vpow2.f32 %v329_v38 }
  0xe7   :  { %398 = vpow2.f32 %v330_v40 }
  0xf0   :  { %v397_v41 = vpop.eup %396 }
  0xf1   :  { %v399_v42 = vpop.eup %398  ;;  %v122_v43 = vadd.f32 1.0, %v397_v41 }
  0xf2   :  { %v123_v44 = vadd.f32 1.0, %v399_v42 }
  0xf3   :  { %400 = vrcp.f32 %v122_v43 }
  0xf4   :  { %402 = vrcp.f32 %v123_v44 }
  0xfd   :  { %v401_v45 = vpop.eup %400 }
  0xfe   :  { %v403_v46 = vpop.eup %402  ;;  %v128_v47 = vmul.f32 %v401_v45, %v110_v34 }
  0xff   :  { %v129_v48 = vmul.f32 %v403_v46, %v112_v36 }
 0x100   :  { %v130_v50 = vpack.c.bf16 %v128_v47, %v128_v47 }
 0x101   :  { %v131_v49 = vpack.c.bf16 %v129_v48, %v129_v48 }
 0x103   :  { %299 = vmatprep.mubr.bf16.mxu1 %v131_v49 }
 0x104   :  { %300 = vmatmul.mubr.bf16.vlgmr.msra.gmra.mrb[0].mxu1 %v130_v50 }
 0x1d7   :  { %v365_v51 = vpop.f32.mrb[0].mxu1 }
 0x1d8   :  { %v366_v53 = vpop.f32.mrb[1].mxu1 }
 0x1d9   :  { %v367_v54 = vadd.f32 %v366_v53, %v365_v51  ;;  %v368_v55 = vpop.f32.mrb[2].mxu1 }
 0x1da   :  { %v369_v56 = vpop.f32.mrb[3].mxu1 }
 0x1db   :  { %v302_v57 = vadd.f32 %v367_v54, %v331_v52 }
 0x1dd   :  { %v348_v58 = vmul.f32 -1.442695, %v302_v57 }
 0x1df   :  { %404 = vpow2.f32 %v348_v58 }
 0x1e9   :  { %v405_v59 = vpop.eup %404 }
 0x1ea   :  { %v310_v60 = vadd.f32 1.0, %v405_v59 }
 0x1ec   :  { %406 = vrcp.f32 %v310_v60 }
 0x1f6   :  { %v407_v61 = vpop.eup %406 }
 0x1f7   :  { %v313_v62 = vmul.f32 %v407_v61, %v302_v57 }
 0x1f9   :  { %v314_v63 = vpack.c.bf16 %v313_v62, %v313_v62 }
 0x1fb   :  { %316 = vst.msk [vmem:[%s519_s5] sm:$0x1] %vm315_vm2, %v314_v63 }

// kernel: decoder_forward.5
= control target key start
LH: loop header
LB: loop body
LE: loop exit
PB: predicated region body
PF: predicated region fallthrough
CT: control target
= control target key end

     0   :  { %v354_v1 = vmov 0   ;;  %vm68_vm0 = vcmask 1041408   ;;  %vm64_vm1 = vcmask 293888   ;;  %v29_v10 = vlaneseq  ;;  %s451_s1 = inlined_call_operand.vmem [shape: bf16[36,256], index: 1, kind: input, shape index: {}]   ;;  %s452_s0 = inlined_call_operand.vmem [shape: bf16[8,36], index: 0, kind: input, shape index: {}]   ;;  %s453_s2 = inlined_call_operand.vmem [shape: f32[1,256], index: 2, kind: input, shape index: {}]   ;;  %s454_s3 = inlined_call_operand.vmem [shape: f32[1,64], index: 3, kind: input, shape index: {}]   ;;  %s455_s4 = inlined_call_operand.vmem [shape: f32[1,64], index: 4, kind: input, shape index: {}]   ;;  %s456_s5 = inlined_call_operand.vmem [shape: bf16[8,256], index: 5, kind: output, shape index: {}]  }
   0x1   :  { %v322_v0 = vld [vmem:[%s451_s1 + $0x4] ss:$8 sps:$4 sm:$0xff]   ;;  %107 = vmatprep.mubr.bf16.mxu0 %v354_v1  ;;  %v324_v2 = vld [vmem:[%s451_s1] ss:$8 sps:$4 sm:$0xff]   ;;  %v325_v3 = vld [vmem:[%s451_s1 + $0x14] ss:$8 sps:$4 sm:$0xff]  }
   0x2   :  { %75 = vmatprep.subr.bf16.mxu0 %v322_v0  ;;  %v26_v4 = vld [vmem:[%s451_s1 + $0x20] sm:$0x33]  ;;  %v327_v5 = vld [vmem:[%s451_s1 + $0x10] ss:$8 sps:$4 sm:$0xff]   ;;  %v30_v11 = vshrl.u32 %v29_v10, 7  ;;  %s355_s1 = smov 64  }
   0x3   :  { %76 = vmatpush1.bf16.msra.mxu0 %v324_v2  ;;  %v305_v6 = vcombine.high %v26_v4, %v26_v4  ;;  %v304_v7 = vcombine.low %v26_v4, %v26_v4  ;;  %v21_v9 = vld [vmem:[%s452_s0] sm:$0xf]  ;;  %vm116_vm2 = vcmask 523264   ;;  %vm155_vm3 = vcmask 519168  }
   0x4   :  { %77 = vmatprep.subr.bf16.mxu0 %v325_v3  ;;  %v31_v12 = vsub.s32 0, %v30_v11  ;;  %v27_v13 = vld [vmem:[%s453_s2] sm:$0x3]  ;;  %v35_v15 = vsub.s32 1, %v30_v11  ;;  %vm206_vm4 = vcmask 1043968  }
   0x5   :  { %v70_v8 = vsel %vm68_vm0, %v304_v7, 0  ;;  %v308_v44 = vld [vmem:[%s454_s3] ss:$0 sm:$0xff] }
   0x6   :  { %v32_v14 = vrot.slane %v27_v13, %v31_v12  ;;  %v36_v18 = vrot.slane %v27_v13, %v35_v15  ;;  %v309_v52 = vld [vmem:[%s455_s4] ss:$0 sm:$0xff] }
   0x7   :  { %78 = vmatpush1.bf16.msra.mxu0 %v327_v5 }
   0x8   :  { %306 = vmatprep.subr.msk.bf16.mxu0 %vm68_vm0, %v305_v6 }
   0xb   :  { %80 = vmatpush1.bf16.msra.mxu0 %v70_v8 }
   0xe   :  { %307 = vmatmul.mubr.msk.bf16.vlgmr.msra.gmra.mrb[0].mxu0 %vm64_vm1, %v21_v9 }
  0xe1   :  { %v109_v16 = vpop.f32.mrb[0].mxu0 }
  0xe2   :  { %v110_v17 = vadd.f32 %v109_v16, %v32_v14  ;;  %v111_v19 = vpop.f32.mrb[1].mxu0 }
  0xe3   :  { %v113_v20 = vpop.f32.mrb[2].mxu0  ;;  %v112_v22 = vadd.f32 %v111_v19, %v36_v18 }
  0xe4   :  { %v114_v21 = vpop.f32.mrb[3].mxu0  ;;  %158 = vrot.lane.b32.xlu0 %v110_v17, %s355_s1  ;;  %v117_v23 = vsel %vm116_vm2, %v110_v17, 0.0 }
  0xe5   :  { %v208_v28 = vsel %vm116_vm2, %v112_v22, 0.0 }
  0xe8   :  { %247 = vrot.lane.b32.xlu0 %v112_v22, %s355_s1 }
 0x107   :  { %118 = vadd.xlane.f32.xlu0 %v117_v23 }
 0x156   :  { %v159_v24 = vpop.permute.xlu0 %158 }
 0x157   :  { %v161_v25 = vsel %vm116_vm2, %v159_v24, 0.0 }
 0x158   :  { %162 = vadd.xlane.f32.xlu1 %v161_v25 }
 0x15a   :  { %v248_v26 = vpop.permute.xlu0 %247 }
 0x15b   :  { %v250_v27 = vsel %vm116_vm2, %v248_v26, 0.0 }
 0x15c   :  { %251 = vadd.xlane.f32.xlu1 %v250_v27 }
 0x160   :  { %209 = vadd.xlane.f32.xlu1 %v208_v28 }
 0x194   :  { %v119_v42 = vpop.xlane.xlu0 %118 }
 0x195   :  { %v121_v43 = vmul.f32 0.015625, %v119_v42 }
 0x197   :  { %v122_v45 = vsub.f32 %v110_v17, %v121_v43 }
 0x199   :  { %v123_v46 = vmul.f32 %v122_v45, %v122_v45 }
 0x19b   :  { %v124_v47 = vsel %vm116_vm2, %v123_v46, 0.0 }
 0x1e5   :  { %v163_v29 = vpop.xlane.xlu1 %162 }
 0x1e6   :  { %v164_v30 = vmul.f32 0.015625, %v163_v29 }
 0x1e8   :  { %v413_v31 = vsub.f32 %v110_v17, %v164_v30 }
 0x1e9   :  { %v252_v32 = vpop.xlane.xlu1 %251 }
 0x1ea   :  { %v253_v33 = vmul.f32 0.015625, %v252_v32  ;;  %v166_v34 = vmul.f32 %v413_v31, %v413_v31 }
 0x1ec   :  { %v417_v35 = vsub.f32 %v112_v22, %v253_v33  ;;  %168 = vrot.lane.b32.xlu1 %v166_v34, %s355_s1 }
 0x1ed   :  { %v210_v36 = vpop.xlane.xlu1 %209 }
 0x1ee   :  { %v211_v37 = vmul.f32 0.015625, %v210_v36  ;;  %v255_v38 = vmul.f32 %v417_v35, %v417_v35 }
 0x1f0   :  { %v212_v39 = vsub.f32 %v112_v22, %v211_v37  ;;  %257 = vrot.lane.b32.xlu1 %v255_v38, %s355_s1 }
 0x1f2   :  { %v213_v40 = vmul.f32 %v212_v39, %v212_v39 }
 0x1f4   :  { %v214_v41 = vsel %vm116_vm2, %v213_v40, 0.0 }
 0x1f5   :  { %215 = vadd.xlane.f32.xlu0 %v214_v41 }
 0x20b   :  { %184 = vrot.lane.b32.xlu0 %v308_v44, %s355_s1 }
 0x214   :  { %125 = vadd.xlane.f32.xlu1 %v124_v47 }
 0x225   :  { %273 = vrot.lane.b32.xlu1 %v308_v44, %s355_s1 }
 0x25e   :  { %v169_v48 = vpop.permute.xlu1 %168 }
 0x25f   :  { %v171_v49 = vsel %vm116_vm2, %v169_v48, 0.0 }
 0x260   :  { %172 = vadd.xlane.f32.xlu0 %v171_v49 }
 0x262   :  { %v258_v50 = vpop.permute.xlu1 %257 }
 0x263   :  { %v260_v51 = vsel %vm116_vm2, %v258_v50, 0.0 }
 0x264   :  { %261 = vadd.xlane.f32.xlu0 %v260_v51 }
 0x27a   :  { %194 = vrot.lane.b32.xlu0 %v309_v52, %s355_s1 }
 0x27e   :  { %283 = vrot.lane.b32.xlu0 %v309_v52, %s355_s1 }
 0x282   :  { %v216_v53 = vpop.xlane.xlu0 %215 }
 0x283   :  { %v217_v54 = vmul.f32 0.015625, %v216_v53 }
 0x285   :  { %v218_v55 = vadd.f32 1e-05, %v217_v54 }
 0x286   :  { %v185_v15 = vpop.permute.xlu0 %184 }
 0x287   :  { %330 = vrsqrt.f32 %v218_v55 }
 0x291   :  { %v331_v56 = vpop.eup %330 }
 0x292   :  { %v220_v57 = vmul.f32 %v331_v56, %v212_v39 }
 0x294   :  { %v228_v58 = vmul.f32 %v308_v44, %v220_v57 }
 0x296   :  { %v236_v59 = vadd.f32 %v309_v52, %v228_v58 }
 0x298   :  { %v316_v60 = vmul.f32 -1.442695, %v236_v59 }
 0x29a   :  { %332 = vpow2.f32 %v316_v60 }
 0x2a1   :  { %v126_v61 = vpop.xlane.xlu1 %125 }
 0x2a2   :  { %v127_v62 = vmul.f32 0.015625, %v126_v61 }
 0x2a4   :  { %v333_v63 = vpop.eup %332  ;;  %v128_v0 = vadd.f32 1e-05, %v127_v62 }
 0x2a5   :  { %v240_v1 = vadd.f32 1.0, %v333_v63  ;;  %v274_v27 = vpop.permute.xlu1 %273 }
 0x2a6   :  { %334 = vrsqrt.f32 %v128_v0 }
 0x2a7   :  { %336 = vrcp.f32 %v240_v1 }
 0x2b0   :  { %v335_v2 = vpop.eup %334 }
 0x2b1   :  { %v337_v3 = vpop.eup %336  ;;  %v130_v4 = vmul.f32 %v335_v2, %v122_v45 }
 0x2b2   :  { %v243_v5 = vmul.f32 %v337_v3, %v236_v59 }
 0x2b3   :  { %v138_v6 = vmul.f32 %v308_v44, %v130_v4 }
 0x2b4   :  { %v244_v7 = vpack.c.bf16 %v243_v5, %v243_v5 }
 0x2b5   :  { %v146_v8 = vadd.f32 %v309_v52, %v138_v6 }
 0x2b6   :  { %245 = vst.msk [vmem:[%s456_s5 + $0x4] sm:$0xf] %vm155_vm3, %v244_v7 }
 0x2b7   :  { %v310_v9 = vmul.f32 -1.442695, %v146_v8 }
 0x2b9   :  { %338 = vpow2.f32 %v310_v9 }
 0x2c3   :  { %v339_v10 = vpop.eup %338 }
 0x2c4   :  { %v150_v11 = vadd.f32 1.0, %v339_v10 }
 0x2c6   :  { %340 = vrcp.f32 %v150_v11 }
 0x2d0   :  { %v341_v12 = vpop.eup %340 }
 0x2d1   :  { %v153_v13 = vmul.f32 %v341_v12, %v146_v8 }
 0x2d3   :  { %v154_v14 = vpack.c.bf16 %v153_v13, %v153_v13 }
 0x2d5   :  { %156 = vst.msk [vmem:[%s456_s5] sm:$0xf] %vm155_vm3, %v154_v14 }
 0x2ed   :  { %v173_v16 = vpop.xlane.xlu0 %172 }
 0x2ee   :  { %v174_v17 = vmul.f32 0.015625, %v173_v16 }
 0x2f0   :  { %v175_v18 = vadd.f32 1e-05, %v174_v17 }
 0x2f1   :  { %v262_v19 = vpop.xlane.xlu0 %261 }
 0x2f2   :  { %342 = vrsqrt.f32 %v175_v18  ;;  %v263_v20 = vmul.f32 0.015625, %v262_v19 }
 0x2f4   :  { %v264_v21 = vadd.f32 1e-05, %v263_v20 }
 0x2f5   :  { %v195_v23 = vpop.permute.xlu0 %194 }
 0x2f6   :  { %344 = vrsqrt.f32 %v264_v21 }
 0x2f9   :  { %v284_v30 = vpop.permute.xlu0 %283 }
 0x2fc   :  { %v343_v22 = vpop.eup %342 }
 0x2fd   :  { %v177_v24 = vmul.f32 %v343_v22, %v413_v31 }
 0x2ff   :  { %v187_v25 = vmul.f32 %v185_v15, %v177_v24 }
 0x300   :  { %v345_v26 = vpop.eup %344 }
 0x301   :  { %v197_v28 = vadd.f32 %v195_v23, %v187_v25  ;;  %v266_v29 = vmul.f32 %v345_v26, %v417_v35 }
 0x303   :  { %v313_v32 = vmul.f32 -1.442695, %v197_v28  ;;  %v276_v33 = vmul.f32 %v274_v27, %v266_v29 }
 0x305   :  { %346 = vpow2.f32 %v313_v32  ;;  %v286_v34 = vadd.f32 %v284_v30, %v276_v33 }
 0x307   :  { %v319_v36 = vmul.f32 -1.442695, %v286_v34 }
 0x309   :  { %348 = vpow2.f32 %v319_v36 }
 0x30f   :  { %v347_v37 = vpop.eup %346 }
 0x310   :  { %v201_v38 = vadd.f32 1.0, %v347_v37 }
 0x312   :  { %350 = vrcp.f32 %v201_v38 }
 0x313   :  { %v349_v39 = vpop.eup %348 }
 0x314   :  { %v290_v40 = vadd.f32 1.0, %v349_v39 }
 0x316   :  { %352 = vrcp.f32 %v290_v40 }
 0x31c   :  { %v351_v31 = vpop.eup %350 }
 0x31d   :  { %v204_v41 = vmul.f32 %v351_v31, %v197_v28 }
 0x31f   :  { %v205_v42 = vpack.c.bf16 %v204_v41, %v204_v41 }
 0x320   :  { %v353_v43 = vpop.eup %352 }
 0x321   :  { %207 = vst.msk [vmem:[%s456_s5] sm:$0xf] %vm206_vm4, %v205_v42  ;;  %v293_v35 = vmul.f32 %v353_v43, %v286_v34 }
 0x323   :  { %v294_v44 = vpack.c.bf16 %v293_v35, %v293_v35 }
 0x325   :  { %295 = vst.msk [vmem:[%s456_s5 + $0x4] sm:$0xf] %vm206_vm4, %v294_v44 }

// kernel: decoder_forward.6
= control target key start
LH: loop header
LB: loop body
LE: loop exit
PB: predicated region body
PF: predicated region fallthrough
CT: control target
= control target key end

     0   :  { %s1370_s18 = smov 0   ;;  %s1613_s0 = inlined_call_operand.vmem [shape: bf16[32,576], index: 0, kind: input, shape index: {}]   ;;  %s1614_s1 = inlined_call_operand.vmem [shape: bf16[576,128], index: 1, kind: input, shape index: {}]   ;;  %s1615_s2 = inlined_call_operand.vmem [shape: f32[1,128], index: 2, kind: input, shape index: {}]   ;;  %s1616_s3 = inlined_call_operand.vmem [shape: f32[1,32], index: 3, kind: input, shape index: {}]   ;;  %s1617_s4 = inlined_call_operand.vmem [shape: f32[1,32], index: 4, kind: input, shape index: {}]   ;;  %s1618_s5 = inlined_call_operand.vmem [shape: bf16[32,128], index: 5, kind: output, shape index: {}]  }
   0x1 LB: > { %s1075_s19 = sadd.s32 4294967295, %s1333_s18   ;;  %p1079_p0 = scmp.ge.s32.totalorder %s1333_s18, 1  ;;  %s1333_s18 = sphi %s1370_s18, %s15_s18  }
   0x2   : > { %p189_p1 = scmp.lt.s32.totalorder %s1333_s18, 3 }
   0x4   : > { %p190_p2 = pnand %p1079_p0, %p189_p1 }
   0x5   : > { %v1236_v0 = vld [vmem:[%s1614_s1 + $0x40] sm:$0xff] (!%p190_p2)   ;;  %v1240_v4 = vld [vmem:[%s1614_s1 + $0x48] sm:$0xff] (!%p190_p2)   ;;  %v1244_v8 = vld [vmem:[%s1614_s1 + $0x50] sm:$0xff] (!%p190_p2)   ;;  %s1080_s25 = sshll.u32 (!%p190_p2), %s1075_s19, 1  ;;  %v1335_v33 = vmov (!%p190_p2), 0.0   ;;  %vm1336_vm0 = vmmov (!%p190_p2), 0  }
   0x6   : > { %193 = sbr.rel (%p190_p2) target bundleno = 862 (0x35e), region = 40  ;;  %v1237_v1 = vld [vmem:[%s1614_s1] sm:$0xff] (!%p190_p2)   ;;  %1161 = vmatprep.subr.bf16.mxu0 (!%p190_p2), %v1236_v0  ;;  %v1241_v5 = vld [vmem:[%s1614_s1 + $0x8] sm:$0xff] (!%p190_p2)   ;;  %v1245_v9 = vld [vmem:[%s1614_s1 + $0x10] sm:$0xff] (!%p190_p2)   ;;  %p219_p3 = scmp.lt.s32.totalorder (!%p190_p2), %s1080_s25, 3  ;;  %vm558_vm1 = vcmask (!%p190_p2), 523264  }
   0x7   : > { %v1238_v2 = vld [vmem:[%s1614_s1 + $0xc0] sm:$0xff] (!%p190_p2)   ;;  %1162 = vmatpush3.bf16.msra.mxu0 (!%p190_p2), %v1237_v1  ;;  %v1242_v6 = vld [vmem:[%s1614_s1 + $0xc8] sm:$0xff] (!%p190_p2)   ;;  %v1246_v10 = vld [vmem:[%s1614_s1 + $0xd0] sm:$0xff] (!%p190_p2)   ;;  %s1337_s30 = smov (!%p190_p2), 64   ;;  %s1338_s6 = smov (!%p190_p2), 96   ;;  %vm685_vm2 = vcmask (!%p190_p2), 261120  }
   0x8   : > { %v1239_v3 = vld [vmem:[%s1614_s1 + $0x80] sm:$0xff] (!%p190_p2)   ;;  %1183 = vmatprep.subr.bf16.mxu1 (!%p190_p2), %v1238_v2  ;;  %1163 = vmatprep.subr.bf16.mxu0 (!%p190_p2), %v1240_v4  ;;  %v1243_v7 = vld [vmem:[%s1614_s1 + $0x88] sm:$0xff] (!%p190_p2)   ;;  %v1247_v11 = vld [vmem:[%s1614_s1 + $0x90] sm:$0xff] (!%p190_p2)   ;;  %s1339_s7 = smov (!%p190_p2), 32   ;;  %vm753_vm3 = vcmask (!%p190_p2), 257024   ;;  %vm842_vm4 = vcmask (!%p190_p2), 519424  }
   0x9   : > { %1184 = vmatpush3.bf16.msra.mxu1 (!%p190_p2), %v1239_v3  ;;  %v1248_v12 = vld [vmem:[%s1614_s1 + $0x58] sm:$0xff] (!%p190_p2)   ;;  %v1252_v16 = vld [vmem:[%s1614_s1 + $0x60] sm:$0xff] (!%p190_p2)   ;;  %v1256_v20 = vld [vmem:[%s1614_s1 + $0x68] sm:$0xff] (!%p190_p2)   ;;  %vm929_vm5 = vcmask (!%p190_p2), 781824   ;;  %vm1016_vm6 = vcmask (!%p190_p2), 1044224  }
   0xa   : > { %1185 = vmatprep.subr.bf16.mxu1 (!%p190_p2), %v1242_v6  ;;  %v1249_v13 = vld [vmem:[%s1614_s1 + $0x18] sm:$0xff] (!%p190_p2)   ;;  %v1253_v17 = vld [vmem:[%s1614_s1 + $0x20] sm:$0xff] (!%p190_p2)   ;;  %v1257_v21 = vld [vmem:[%s1614_s1 + $0x28] sm:$0xff] (!%p190_p2)  }
   0xb   : > { %1164 = vmatpush3.bf16.msra.mxu0 (!%p190_p2), %v1241_v5  ;;  %v1250_v14 = vld [vmem:[%s1614_s1 + $0xd8] sm:$0xff] (!%p190_p2)   ;;  %v1254_v18 = vld [vmem:[%s1614_s1 + $0xe0] sm:$0xff] (!%p190_p2)   ;;  %v1258_v22 = vld [vmem:[%s1614_s1 + $0xe8] sm:$0xff] (!%p190_p2)  }
   0xc   : > { %1165 = vmatprep.subr.bf16.mxu0 (!%p190_p2), %v1244_v8  ;;  %v1251_v15 = vld [vmem:[%s1614_s1 + $0x98] sm:$0xff] (!%p190_p2)   ;;  %v1255_v19 = vld [vmem:[%s1614_s1 + $0xa0] sm:$0xff] (!%p190_p2)   ;;  %v1259_v23 = vld [vmem:[%s1614_s1 + $0xa8] sm:$0xff] (!%p190_p2)  }
   0xd   : > { %1186 = vmatpush3.bf16.msra.mxu1 %v1243_v7  ;;  %s1620_s25 = smov (!%p219_p3, %s1080_s25), 3  ;;  %v1260_v24 = vld [vmem:[%s1614_s1 + $0x70] sm:$0xff]   ;;  %v1264_v28 = vld [vmem:[%s1614_s1 + $0x78] sm:$0xff]   ;;  %v1274_v37 = vld [vmem:[%s1614_s1 + $0x100] sm:$0xff]  }
   0xe   : > { %1187 = vmatprep.subr.bf16.mxu1 %v1246_v10  ;;  %s1222_s24 = smul.u32 20, %s1620_s25  ;;  %v1261_v25 = vld [vmem:[%s1614_s1 + $0x30] sm:$0xff]   ;;  %v1265_v29 = vld [vmem:[%s1614_s1 + $0x38] sm:$0xff]   ;;  %v1275_v38 = vld [vmem:[%s1614_s1 + $0x108] sm:$0xff]   ;;  %s1083_s11 = sshll.u32 %s1620_s25, 2 }
   0xf   : > { %1166 = vmatpush3.bf16.msra.mxu0 %v1245_v9  ;;  %v1262_v26 = vld [vmem:[%s1614_s1 + $0xf0] sm:$0xff]   ;;  %v1266_v30 = vld [vmem:[%s1614_s1 + $0xf8] sm:$0xff]   ;;  %v1084_v43 = vld [vmem:[%s1615_s2] ss:$0 sm:$0xff]  ;;  %s1592_s14 = scalar_lea.vmem %s1618_s5, %s1083_s11 }
  0x10   : > { %1167 = vmatprep.subr.bf16.mxu0 %v1248_v12  ;;  %v1263_v27 = vld [vmem:[%s1614_s1 + $0xb0] sm:$0xff]   ;;  %s1473_s10 = scalar_lea.vmem %s1613_s0, %s1222_s24  ;;  %v1270_v34 = vld [vmem:[%s1614_s1 + $0xb8] sm:$0xff]  }
  0x11   : > { %1188 = vmatpush3.bf16.msra.mxu1 %v1247_v11  ;;  %v1267_v31 = vld [vmem:[%s1473_s10] ss:$20 sps:$4 sm:$0xff]   ;;  %v1269_v32 = vld [vmem:[%s1473_s10 + $0x4] ss:$20 sps:$4 sm:$0xff]   ;;  %v1271_v35 = vld [vmem:[%s1473_s10 + $0x8] ss:$20 sps:$4 sm:$0xff]  }
  0x12   : > { %1189 = vmatprep.subr.bf16.mxu1 %v1250_v14  ;;  %594 = vmatprep.mubr.bf16.mxu0 %v1269_v32  ;;  %v1273_v36 = vld [vmem:[%s1473_s10 + $0xc] ss:$20 sps:$4 sm:$0xff]   ;;  %v1276_v39 = vld [vmem:[%s1614_s1 + $0x110] sm:$0xff]   ;;  %v1277_v40 = vld [vmem:[%s1614_s1 + $0x118] sm:$0xff]  }
  0x13   : > { %1168 = vmatpush3.bf16.msra.mxu0 %v1249_v13  ;;  %635 = vmatprep.mubr.bf16.mxu1 %v1273_v36  ;;  %v1278_v41 = vld [vmem:[%s1473_s10 + $0x10] ss:$20 sps:$4 sm:$0xff]  }
  0x14   : > { %1169 = vmatprep.subr.bf16.mxu0 %v1252_v16 }
  0x15   : > { %1190 = vmatpush3.bf16.msra.mxu1 %v1251_v15 }
  0x16   : > { %1191 = vmatprep.subr.bf16.mxu1 %v1254_v18 }
  0x17   : > { %1170 = vmatpush3.bf16.msra.mxu0 %v1253_v17 }
  0x18   : > { %1171 = vmatprep.subr.bf16.mxu0 %v1256_v20 }
  0x19   : > { %1192 = vmatpush3.bf16.msra.mxu1 %v1255_v19 }
  0x1a   : > { %1193 = vmatprep.subr.bf16.mxu1 %v1258_v22 }
  0x1b   : > { %1172 = vmatpush3.bf16.msra.mxu0 %v1257_v21 }
  0x1c   : > { %1173 = vmatprep.subr.bf16.mxu0 %v1260_v24 }
  0x1d   : > { %1194 = vmatpush3.bf16.msra.mxu1 %v1259_v23 }
  0x1e   : > { %1195 = vmatprep.subr.bf16.mxu1 %v1262_v26 }
  0x1f   : > { %1174 = vmatpush3.bf16.msra.mxu0 %v1261_v25 }
  0x20   : > { %1175 = vmatprep.subr.bf16.mxu0 %v1264_v28 }
  0x21   : > { %1196 = vmatpush3.bf16.msra.mxu1 %v1263_v27 }
  0x22   : > { %1197 = vmatprep.subr.bf16.mxu1 %v1266_v30 }
  0x23   : > { %1176 = vmatpush3.bf16.msra.mxu0 %v1265_v29 }
  0x24   : > { %1210 = vmatprep.subr.bf16.mxu0 %v1335_v33 }
  0x25   : > { %1198 = vmatpush3.bf16.msra.mxu1 %v1270_v34 }
  0x26   : > { %595 = vmatmul.mubr.bf16.vlgmr.msra.gmra.mrb[0].mxu0 %v1267_v31 }
  0x27   : > { %1218 = vmatprep.mubr.msk.bf16.mxu0 %vm1336_vm0, %v1335_v33  ;;  %1211 = vmatpush3.bf16.msra.mxu0 %v1274_v37 }
  0x28   : > { %636 = vmatmul.mubr.bf16.vlgmr.msra.gmra.mrb[0].mxu1 %v1271_v35  ;;  %1212 = vmatprep.subr.bf16.mxu0 %v1335_v33 }
  0x2b   : > { %1213 = vmatpush3.bf16.msra.mxu0 %v1275_v38 }
  0x2c   : > { %1214 = vmatprep.subr.bf16.mxu0 %v1335_v33 }
  0x2f   : > { %1215 = vmatpush3.bf16.msra.mxu0 %v1276_v39 }
  0x30   : > { %1216 = vmatprep.subr.bf16.mxu0 %v1335_v33 }
  0x33   : > { %1217 = vmatpush3.bf16.msra.mxu0 %v1277_v40 }
  0x36   : > { %1219 = vmatmul.mubr.msk.bf16.vlgmr.msra.gmra.mrb[4].mxu0 %vm558_vm1, %v1278_v41 }
  0xf9   : > { %v1177_v42 = vpop.f32.mrb[0].mxu0 }
  0xfa   : > { %v1178_v44 = vpop.f32.mrb[1].mxu0 }
  0xfb   : > { %v1179_v45 = vadd.f32 %v1178_v44, %v1177_v42  ;;  %v1180_v46 = vpop.f32.mrb[2].mxu0  ;;  %v1199_v47 = vpop.f32.mrb[0].mxu1 }
  0xfc   : > { %v1181_v48 = vpop.f32.mrb[3].mxu0  ;;  %v1200_v51 = vpop.f32.mrb[1].mxu1 }
  0xfd   : > { %v597_v49 = vadd.f32 %v1179_v45, %v1084_v43  ;;  %v1182_v50 = vadd.f32 %v1181_v48, %v1180_v46  ;;  %v1201_v52 = vadd.f32 %v1200_v51, %v1199_v47  ;;  %v1202_v53 = vpop.f32.mrb[2].mxu1 }
  0xfe   : > { %v1203_v55 = vpop.f32.mrb[3].mxu1 }
  0xff   : > { %v600_v54 = vadd.f32 %v1182_v50, %v1084_v43  ;;  %v1204_v56 = vadd.f32 %v1203_v55, %v1202_v53  ;;  %v638_v57 = vadd.f32 %v1201_v52, %v597_v49  ;;  %v1133_v49 = vld [vmem:[%s1616_s3] ss:$0 sm:$0xff] }
 0x100   : > { %v1134_v50 = vld [vmem:[%s1617_s4] ss:$0 sm:$0xff] }
 0x101   : > { %v641_v58 = vadd.f32 %v1204_v56, %v600_v54 }
 0x109   : > { %v678_v59 = vpop.f32.mrb[4].mxu0 }
 0x10a   : > { %v1504_v60 = vadd.f32 %v678_v59, %v638_v57  ;;  %v1220_v61 = vpop.f32.mrb[5].mxu0 }
 0x10b   : > { %v681_v62 = vpop.f32.mrb[6].mxu0 }
 0x10c   : > { %v1506_v63 = vadd.f32 %v681_v62, %v641_v58  ;;  %v1221_v0 = vpop.f32.mrb[7].mxu0  ;;  %845 = vrot.lane.b32.xlu1 %v1504_v60, %s1337_s30  ;;  %758 = vrot.lane.b32.xlu0 %v1504_v60, %s1338_s6  ;;  %v686_v13 = vsel %vm685_vm2, %v1504_v60, 0.0 }
 0x10e   : > { %v689_v14 = vsel %vm685_vm2, %v1506_v63, 0.0 }
 0x110   : > { %847 = vrot.lane.b32.xlu1 %v1506_v63, %s1337_s30  ;;  %760 = vrot.lane.b32.xlu0 %v1506_v63, %s1338_s6 }
 0x114   : > { %934 = vrot.lane.b32.xlu1 %v1506_v63, %s1339_s7  ;;  %932 = vrot.lane.b32.xlu0 %v1504_v60, %s1339_s7 }
 0x17e   : > { %v846_v1 = vpop.permute.xlu1 %845  ;;  %v759_v2 = vpop.permute.xlu0 %758 }
 0x17f   : > { %v764_v3 = vsel %vm685_vm2, %v759_v2, 0.0  ;;  %v851_v6 = vsel %vm685_vm2, %v846_v1, 0.0 }
 0x180   : > { %765 = vadd.xlane.f32.xlu0 %v764_v3 }
 0x182   : > { %v848_v4 = vpop.permute.xlu1 %847  ;;  %v761_v5 = vpop.permute.xlu0 %760 }
 0x183   : > { %v767_v7 = vsel %vm685_vm2, %v761_v5, 0.0  ;;  %v854_v9 = vsel %vm685_vm2, %v848_v4, 0.0 }
 0x184   : > { %852 = vadd.xlane.f32.xlu0 %v851_v6  ;;  %768 = vadd.xlane.f32.xlu1 %v767_v7 }
 0x186   : > { %v933_v8 = vpop.permute.xlu0 %932  ;;  %v935_v11 = vpop.permute.xlu1 %934 }
 0x187   : > { %v938_v10 = vsel %vm685_vm2, %v933_v8, 0.0  ;;  %v941_v12 = vsel %vm685_vm2, %v935_v11, 0.0 }
 0x188   : > { %855 = vadd.xlane.f32.xlu0 %v854_v9  ;;  %939 = vadd.xlane.f32.xlu1 %v938_v10 }
 0x18c   : > { %942 = vadd.xlane.f32.xlu0 %v941_v12  ;;  %687 = vadd.xlane.f32.xlu1 %v686_v13 }
 0x190   : > { %690 = vadd.xlane.f32.xlu0 %v689_v14 }
 0x20d   : > { %v766_v15 = vpop.xlane.xlu0 %765 }
 0x20e   : > { %v770_v16 = vmul.f32 0.03125, %v766_v15 }
 0x210   : > { %v1531_v17 = vsub.f32 %v1504_v60, %v770_v16 }
 0x211   : > { %v769_v18 = vpop.xlane.xlu1 %768  ;;  %v853_v19 = vpop.xlane.xlu0 %852 }
 0x212   : > { %v771_v20 = vmul.f32 0.03125, %v769_v18  ;;  %v857_v21 = vmul.f32 0.03125, %v853_v19  ;;  %v774_v22 = vmul.f32 %v1531_v17, %v1531_v17 }
 0x214   : > { %v1536_v23 = vsub.f32 %v1506_v63, %v771_v20  ;;  %v1539_v24 = vsub.f32 %v1504_v60, %v857_v21  ;;  %778 = vrot.lane.b32.xlu1 %v774_v22, %s1338_s6 }
 0x215   : > { %v940_v25 = vpop.xlane.xlu1 %939  ;;  %v856_v26 = vpop.xlane.xlu0 %855 }
 0x216   : > { %v944_v27 = vmul.f32 0.03125, %v940_v25  ;;  %v858_v28 = vmul.f32 0.03125, %v856_v26  ;;  %v775_v29 = vmul.f32 %v1536_v23, %v1536_v23  ;;  %v861_v30 = vmul.f32 %v1539_v24, %v1539_v24 }
 0x218   : > { %v1547_v31 = vsub.f32 %v1504_v60, %v944_v27  ;;  %v1550_v32 = vsub.f32 %v1506_v63, %v858_v28  ;;  %780 = vrot.lane.b32.xlu0 %v775_v29, %s1338_s6  ;;  %865 = vrot.lane.b32.xlu1 %v861_v30, %s1337_s30 }
 0x219   : > { %v943_v33 = vpop.xlane.xlu0 %942  ;;  %v688_v39 = vpop.xlane.xlu1 %687 }
 0x21a   : > { %v945_v34 = vmul.f32 0.03125, %v943_v33  ;;  %v948_v35 = vmul.f32 %v1547_v31, %v1547_v31  ;;  %v862_v36 = vmul.f32 %v1550_v32, %v1550_v32  ;;  %v693_v40 = vmul.f32 0.03125, %v688_v39 }
 0x21c   : > { %v1559_v37 = vsub.f32 %v1506_v63, %v945_v34  ;;  %952 = vrot.lane.b32.xlu0 %v948_v35, %s1339_s7  ;;  %867 = vrot.lane.b32.xlu1 %v862_v36, %s1337_s30  ;;  %v695_v41 = vsub.f32 %v1504_v60, %v693_v40 }
 0x21d   : > { %v691_v42 = vpop.xlane.xlu0 %690 }
 0x21e   : > { %v949_v38 = vmul.f32 %v1559_v37, %v1559_v37  ;;  %v697_v43 = vmul.f32 %v695_v41, %v695_v41  ;;  %v694_v44 = vmul.f32 0.03125, %v691_v42 }
 0x220   : > { %954 = vrot.lane.b32.xlu1 %v949_v38, %s1339_s7  ;;  %v699_v45 = vsel %vm685_vm2, %v697_v43, 0.0  ;;  %v696_v46 = vsub.f32 %v1506_v63, %v694_v44 }
 0x222   : > { %v698_v47 = vmul.f32 %v696_v46, %v696_v46 }
 0x224   : > { %v702_v48 = vsel %vm685_vm2, %v698_v47, 0.0 }
 0x23b   : > { %700 = vadd.xlane.f32.xlu0 %v699_v45 }
 0x244   : > { %703 = vadd.xlane.f32.xlu1 %v702_v48 }
 0x255   : > { %804 = vrot.lane.b32.xlu1 %v1133_v49, %s1339_s7 }
 0x259   : > { %815 = vrot.lane.b32.xlu1 %v1134_v50, %s1339_s7 }
 0x25d   : > { %902 = vrot.lane.b32.xlu1 %v1134_v50, %s1337_s30 }
 0x261   : > { %978 = vrot.lane.b32.xlu1 %v1133_v49, %s1338_s6 }
 0x265   : > { %989 = vrot.lane.b32.xlu1 %v1134_v50, %s1338_s6 }
 0x286   : > { %v779_v51 = vpop.permute.xlu1 %778 }
 0x287   : > { %v784_v52 = vsel %vm685_vm2, %v779_v51, 0.0 }
 0x288   : > { %785 = vadd.xlane.f32.xlu0 %v784_v52 }
 0x28a   : > { %v781_v53 = vpop.permute.xlu0 %780  ;;  %v866_v54 = vpop.permute.xlu1 %865 }
 0x28b   : > { %v871_v55 = vsel %vm685_vm2, %v866_v54, 0.0  ;;  %v787_v59 = vsel %vm685_vm2, %v781_v53, 0.0 }
 0x28c   : > { %872 = vadd.xlane.f32.xlu0 %v871_v55 }
 0x28e   : > { %v953_v56 = vpop.permute.xlu0 %952  ;;  %v868_v58 = vpop.permute.xlu1 %867 }
 0x28f   : > { %v958_v57 = vsel %vm685_vm2, %v953_v56, 0.0  ;;  %v874_v60 = vsel %vm685_vm2, %v868_v58, 0.0 }
 0x290   : > { %959 = vadd.xlane.f32.xlu0 %v958_v57 }
 0x292   : > { %v955_v61 = vpop.permute.xlu1 %954 }
 0x293   : > { %v961_v62 = vsel %vm685_vm2, %v955_v61, 0.0 }
 0x294   : > { %788 = vadd.xlane.f32.xlu0 %v787_v59 }
 0x298   : > { %875 = vadd.xlane.f32.xlu0 %v874_v60 }
 0x29c   : > { %962 = vadd.xlane.f32.xlu0 %v961_v62 }
 0x2b2   : > { %891 = vrot.lane.b32.xlu0 %v1133_v49, %s1337_s30 }
 0x2c8   : > { %v701_v63 = vpop.xlane.xlu0 %700 }
 0x2c9   : > { %v705_v0 = vmul.f32 0.03125, %v701_v63 }
 0x2cb   : > { %v707_v1 = vadd.f32 1e-05, %v705_v0 }
 0x2cd   : > { %1279 = vrsqrt.f32 %v707_v1 }
 0x2d1   : > { %v704_v2 = vpop.xlane.xlu1 %703 }
 0x2d2   : > { %v706_v3 = vmul.f32 0.03125, %v704_v2 }
 0x2d4   : > { %v708_v4 = vadd.f32 1e-05, %v706_v3 }
 0x2d5   : > { %v805_v30 = vpop.permute.xlu1 %804 }
 0x2d6   : > { %1281 = vrsqrt.f32 %v708_v4 }
 0x2d7   : > { %v1280_v5 = vpop.eup %1279 }
 0x2d8   : > { %v711_v6 = vmul.f32 %v1280_v5, %v695_v41 }
 0x2d9   : > { %v816_v38 = vpop.permute.xlu1 %815 }
 0x2da   : > { %v720_v7 = vmul.f32 %v1133_v49, %v711_v6 }
 0x2dc   : > { %v729_v8 = vadd.f32 %v1134_v50, %v720_v7 }
 0x2dd   : > { %v903_v44 = vpop.permute.xlu1 %902 }
 0x2de   : > { %v1129_v9 = vmul.f32 -1.442695, %v729_v8 }
 0x2e0   : > { %v1282_v10 = vpop.eup %1281  ;;  %1283 = vpow2.f32 %v1129_v9 }
 0x2e1   : > { %v712_v11 = vmul.f32 %v1282_v10, %v696_v46  ;;  %v979_v52 = vpop.permute.xlu1 %978 }
 0x2e3   : > { %v721_v12 = vmul.f32 %v1133_v49, %v712_v11 }
 0x2e5   : > { %v730_v13 = vadd.f32 %v1134_v50, %v721_v12  ;;  %v990_v63 = vpop.permute.xlu1 %989 }
 0x2e7   : > { %v1130_v14 = vmul.f32 -1.442695, %v730_v13 }
 0x2e9   : > { %1285 = vpow2.f32 %v1130_v14 }
 0x2ea   : > { %v1284_v15 = vpop.eup %1283 }
 0x2eb   : > { %v737_v16 = vadd.f32 1.0, %v1284_v15 }
 0x2ed   : > { %1287 = vrcp.f32 %v737_v16 }
 0x2f3   : > { %v1286_v18 = vpop.eup %1285 }
 0x2f4   : > { %v738_v19 = vadd.f32 1.0, %v1286_v18 }
 0x2f6   : > { %1289 = vrcp.f32 %v738_v19 }
 0x2f7   : > { %v1288_v20 = vpop.eup %1287 }
 0x2f8   : > { %v743_v21 = vmul.f32 %v1288_v20, %v729_v8 }
 0x2fa   : > { %v1153_v22 = vpack.c.bf16 %v743_v21, %v743_v21 }
 0x2fc   : > { %754 = vst.msk [vmem:[%s1592_s14] sm:$0xf] %vm753_vm3, %v1153_v22 }
 0x300   : > { %v1290_v25 = vpop.eup %1289 }
 0x301   : > { %v744_v26 = vmul.f32 %v1290_v25, %v730_v13 }
 0x303   : > { %v1154_v27 = vpack.c.bf16 %v744_v26, %v744_v26 }
 0x305   : > { %755 = vst.msk [vmem:[%s1592_s14 + $0x4] sm:$0xf] %vm753_vm3, %v1154_v27 }
 0x315   : > { %v786_v28 = vpop.xlane.xlu0 %785 }
 0x316   : > { %v790_v29 = vmul.f32 0.03125, %v786_v28 }
 0x318   : > { %v792_v33 = vadd.f32 1e-05, %v790_v29 }
 0x319   : > { %v873_v34 = vpop.xlane.xlu0 %872 }
 0x31a   : > { %1291 = vrsqrt.f32 %v792_v33  ;;  %v877_v35 = vmul.f32 0.03125, %v873_v34 }
 0x31c   : > { %v879_v36 = vadd.f32 1e-05, %v877_v35 }
 0x31d   : > { %v960_v39 = vpop.xlane.xlu0 %959 }
 0x31e   : > { %v964_v40 = vmul.f32 0.03125, %v960_v39  ;;  %1293 = vrsqrt.f32 %v879_v36 }
 0x320   : > { %v966_v41 = vadd.f32 1e-05, %v964_v40 }
 0x321   : > { %v789_v42 = vpop.xlane.xlu0 %788 }
 0x322   : > { %1295 = vrsqrt.f32 %v966_v41  ;;  %v791_v43 = vmul.f32 0.03125, %v789_v42 }
 0x324   : > { %v1292_v45 = vpop.eup %1291  ;;  %v793_v46 = vadd.f32 1e-05, %v791_v43 }
 0x325   : > { %v796_v47 = vmul.f32 %v1292_v45, %v1531_v17  ;;  %v876_v48 = vpop.xlane.xlu0 %875 }
 0x326   : > { %1297 = vrsqrt.f32 %v793_v46  ;;  %v878_v49 = vmul.f32 0.03125, %v876_v48 }
 0x327   : > { %v807_v50 = vmul.f32 %v805_v30, %v796_v47 }
 0x328   : > { %v880_v51 = vadd.f32 1e-05, %v878_v49  ;;  %v1294_v53 = vpop.eup %1293 }
 0x329   : > { %v818_v54 = vadd.f32 %v816_v38, %v807_v50  ;;  %v963_v55 = vpop.xlane.xlu0 %962  ;;  %v883_v60 = vmul.f32 %v1294_v53, %v1539_v24 }
 0x32a   : > { %1299 = vrsqrt.f32 %v880_v51  ;;  %v965_v56 = vmul.f32 0.03125, %v963_v55 }
 0x32b   : > { %v1135_v57 = vmul.f32 -1.442695, %v818_v54 }
 0x32c   : > { %v1296_v58 = vpop.eup %1295  ;;  %v967_v59 = vadd.f32 1e-05, %v965_v56 }
 0x32d   : > { %1301 = vpow2.f32 %v1135_v57  ;;  %v970_v61 = vmul.f32 %v1296_v58, %v1547_v31  ;;  %v892_v17 = vpop.permute.xlu0 %891 }
 0x32e   : > { %1303 = vrsqrt.f32 %v967_v59  ;;  %v894_v62 = vmul.f32 %v892_v17, %v883_v60 }
 0x32f   : > { %v981_v0 = vmul.f32 %v979_v52, %v970_v61 }
 0x330   : > { %v1298_v1 = vpop.eup %1297  ;;  %v905_v2 = vadd.f32 %v903_v44, %v894_v62 }
 0x331   : > { %v797_v3 = vmul.f32 %v1298_v1, %v1536_v23  ;;  %v992_v4 = vadd.f32 %v990_v63, %v981_v0 }
 0x332   : > { %v1141_v5 = vmul.f32 -1.442695, %v905_v2 }
 0x333   : > { %v808_v6 = vmul.f32 %v805_v30, %v797_v3  ;;  %v1147_v7 = vmul.f32 -1.442695, %v992_v4 }
 0x334   : > { %v1300_v8 = vpop.eup %1299  ;;  %1305 = vpow2.f32 %v1141_v5 }
 0x335   : > { %v819_v9 = vadd.f32 %v816_v38, %v808_v6  ;;  %v884_v24 = vmul.f32 %v1300_v8, %v1550_v32  ;;  %1307 = vpow2.f32 %v1147_v7 }
 0x337   : > { %v1302_v31 = vpop.eup %1301  ;;  %v1136_v10 = vmul.f32 -1.442695, %v819_v9  ;;  %v895_v11 = vmul.f32 %v892_v17, %v884_v24 }
 0x338   : > { %v1304_v12 = vpop.eup %1303  ;;  %v826_v13 = vadd.f32 1.0, %v1302_v31 }
 0x339   : > { %1309 = vpow2.f32 %v1136_v10  ;;  %v971_v14 = vmul.f32 %v1304_v12, %v1559_v37  ;;  %v906_v15 = vadd.f32 %v903_v44, %v895_v11 }
 0x33a   : > { %1311 = vrcp.f32 %v826_v13 }
 0x33b   : > { %v982_v23 = vmul.f32 %v979_v52, %v971_v14  ;;  %v1142_v16 = vmul.f32 -1.442695, %v906_v15 }
 0x33d   : > { %1313 = vpow2.f32 %v1142_v16  ;;  %v993_v18 = vadd.f32 %v990_v63, %v982_v23 }
 0x33e   : > { %v1306_v19 = vpop.eup %1305 }
 0x33f   : > { %v913_v20 = vadd.f32 1.0, %v1306_v19  ;;  %v1148_v21 = vmul.f32 -1.442695, %v993_v18  ;;  %v1308_v32 = vpop.eup %1307 }
 0x340   : > { %v1000_v25 = vadd.f32 1.0, %v1308_v32 }
 0x341   : > { %1315 = vpow2.f32 %v1148_v21 }
 0x342   : > { %1317 = vrcp.f32 %v913_v20 }
 0x343   : > { %v1310_v22 = vpop.eup %1309 }
 0x344   : > { %v1312_v26 = vpop.eup %1311  ;;  %v827_v27 = vadd.f32 1.0, %v1310_v22 }
 0x345   : > { %v832_v28 = vmul.f32 %v1312_v26, %v818_v54 }
 0x346   : > { %1319 = vrcp.f32 %v827_v27 }
 0x347   : > { %v1314_v37 = vpop.eup %1313  ;;  %v1155_v29 = vpack.c.bf16 %v832_v28, %v832_v28  ;;  %1321 = vrcp.f32 %v1000_v25 }
 0x348   : > { %v914_v30 = vadd.f32 1.0, %v1314_v37 }
 0x349   : > { %843 = vst.msk [vmem:[%s1592_s14] sm:$0xf] %vm842_vm4, %v1155_v29 }
 0x34a   : > { %1323 = vrcp.f32 %v914_v30 }
 0x34b   : > { %v1316_v33 = vpop.eup %1315 }
 0x34c   : > { %v1318_v34 = vpop.eup %1317  ;;  %v1001_v35 = vadd.f32 1.0, %v1316_v33 }
 0x34d   : > { %v919_v38 = vmul.f32 %v1318_v34, %v905_v2 }
 0x34e   : > { %1325 = vrcp.f32 %v1001_v35 }
 0x34f   : > { %v1157_v43 = vpack.c.bf16 %v919_v38, %v919_v38 }
 0x350   : > { %v1320_v36 = vpop.eup %1319 }
 0x351   : > { %v1322_v39 = vpop.eup %1321  ;;  %v833_v40 = vmul.f32 %v1320_v36, %v819_v9  ;;  %930 = vst.msk [vmem:[%s1592_s14] sm:$0xf] %vm929_vm5, %v1157_v43 }
 0x352   : > { %v1006_v44 = vmul.f32 %v1322_v39, %v992_v4 }
 0x353   : > { %v1156_v41 = vpack.c.bf16 %v833_v40, %v833_v40 }
 0x354   : > { %v1324_v42 = vpop.eup %1323  ;;  %v1159_v47 = vpack.c.bf16 %v1006_v44, %v1006_v44 }
 0x355   : > { %844 = vst.msk [vmem:[%s1592_s14 + $0x4] sm:$0xf] %vm842_vm4, %v1156_v41  ;;  %v920_v45 = vmul.f32 %v1324_v42, %v906_v15 }
 0x356   : > { %1017 = vst.msk [vmem:[%s1592_s14] sm:$0xf] %vm1016_vm6, %v1159_v47 }
 0x357   : > { %v1158_v46 = vpack.c.bf16 %v920_v45, %v920_v45 }
 0x358   : > { %v1326_v48 = vpop.eup %1325 }
 0x359   : > { %931 = vst.msk [vmem:[%s1592_s14 + $0x4] sm:$0xf] %vm929_vm5, %v1158_v46  ;;  %v1007_v49 = vmul.f32 %v1326_v48, %v993_v18 }
 0x35b   : > { %v1160_v50 = vpack.c.bf16 %v1007_v49, %v1007_v49 }
 0x35d   : > { %1018 = vst.msk [vmem:[%s1592_s14 + $0x4] sm:$0xf] %vm1016_vm6, %v1160_v50 }
 0x35e PF: > { %s15_s18 = sadd.s32 1, %s1333_s18  }
 0x35f   : > { %p12_p4 = scmp.ge.s32.totalorder %s15_s18, 4  }
 0x361   :  { %14 = sbr.rel (!%p12_p4) target bundleno = 1 (0x1), region = 70 }

// kernel: decoder_forward.7
= control target key start
LH: loop header
LB: loop body
LE: loop exit
PB: predicated region body
PF: predicated region fallthrough
CT: control target
= control target key end

     0   :  { %s955_s18 = smov 0   ;;  %s1051_s0 = inlined_call_operand.vmem [shape: bf16[128,288], index: 0, kind: input, shape index: {}]   ;;  %s1052_s1 = inlined_call_operand.vmem [shape: bf16[288,128], index: 1, kind: input, shape index: {}]   ;;  %s1053_s2 = inlined_call_operand.vmem [shape: f32[1,128], index: 2, kind: input, shape index: {}]   ;;  %s1054_s3 = inlined_call_operand.vmem [shape: f32[1,32], index: 3, kind: input, shape index: {}]   ;;  %s1055_s4 = inlined_call_operand.vmem [shape: f32[1,32], index: 4, kind: input, shape index: {}]   ;;  %s1056_s5 = inlined_call_operand.vmem [shape: f32[128,128], index: 5, kind: output, shape index: {}]  }
   0x1 LB: > { %s714_s19 = sadd.s32 4294967295, %s923_s18   ;;  %p718_p0 = scmp.ge.s32.totalorder %s923_s18, 1  ;;  %s923_s18 = sphi %s955_s18, %s15_s18  }
   0x2   : > { %p189_p1 = scmp.lt.s32.totalorder %s923_s18, 3 }
   0x4   : > { %p190_p2 = pnand %p718_p0, %p189_p1 }
   0x5   : > { %v851_v0 = vld [vmem:[%s1052_s1 + $0x40] sm:$0xff] (!%p190_p2)   ;;  %s719_s20 = sshll.u32 (!%p190_p2), %s714_s19, 3  ;;  %v853_v2 = vld [vmem:[%s1052_s1 + $0x48] sm:$0xff] (!%p190_p2)   ;;  %v855_v4 = vld [vmem:[%s1052_s1 + $0x50] sm:$0xff] (!%p190_p2)   ;;  %vm459_vm0 = vcmask (!%p190_p2), 261120  }
   0x6   : > { %193 = sbr.rel (%p190_p2) target bundleno = 302 (0x12e), region = 40  ;;  %v852_v1 = vld [vmem:[%s1052_s1] sm:$0xff] (!%p190_p2)   ;;  %768 = vmatprep.subr.bf16.mxu0 (!%p190_p2), %v851_v0  ;;  %826 = vmatprep.subr.bf16.mxu1 (!%p190_p2), %v851_v0  ;;  %p219_p3 = scmp.lt.s32.totalorder (!%p190_p2), %s719_s20, 15  ;;  %v854_v3 = vld [vmem:[%s1052_s1 + $0x8] sm:$0xff] (!%p190_p2)   ;;  %v856_v5 = vld [vmem:[%s1052_s1 + $0x10] sm:$0xff] (!%p190_p2)  }
   0x7   : > { %769 = vmatpush3.bf16.msra.mxu0 (!%p190_p2), %v852_v1  ;;  %834 = vmatpush3.bf16.msra.mxu1 (!%p190_p2), %v852_v1  ;;  %v857_v6 = vld [vmem:[%s1052_s1 + $0x58] sm:$0xff] (!%p190_p2)   ;;  %v859_v8 = vld [vmem:[%s1052_s1 + $0x60] sm:$0xff] (!%p190_p2)   ;;  %v861_v10 = vld [vmem:[%s1052_s1 + $0x68] sm:$0xff] (!%p190_p2)  }
   0x8   : > { %770 = vmatprep.subr.bf16.mxu0 (!%p190_p2), %v853_v2  ;;  %827 = vmatprep.subr.bf16.mxu1 (!%p190_p2), %v853_v2  ;;  %v858_v7 = vld [vmem:[%s1052_s1 + $0x18] sm:$0xff] (!%p190_p2)   ;;  %v860_v9 = vld [vmem:[%s1052_s1 + $0x20] sm:$0xff] (!%p190_p2)   ;;  %v862_v13 = vld [vmem:[%s1052_s1 + $0x28] sm:$0xff] (!%p190_p2)  }
   0x9   : > { %v863_v14 = vld [vmem:[%s1052_s1 + $0x70] sm:$0xff] (!%p190_p2)   ;;  %v865_v16 = vld [vmem:[%s1052_s1 + $0x78] sm:$0xff] (!%p190_p2)   ;;  %v873_v18 = vld [vmem:[%s1052_s1 + $0x80] sm:$0xff] (!%p190_p2)  }
   0xa   : > { %v864_v15 = vld [vmem:[%s1052_s1 + $0x30] sm:$0xff] (!%p190_p2)   ;;  %v866_v17 = vld [vmem:[%s1052_s1 + $0x38] sm:$0xff] (!%p190_p2)   ;;  %v874_v22 = vld [vmem:[%s1052_s1 + $0x88] sm:$0xff] (!%p190_p2)  }
   0xb   : > { %771 = vmatpush3.bf16.msra.mxu0 (!%p190_p2), %v854_v3  ;;  %835 = vmatpush3.bf16.msra.mxu1 (!%p190_p2), %v854_v3  ;;  %v723_v42 = vld [vmem:[%s1053_s2] ss:$0 sm:$0xff] (!%p190_p2) }
   0xc   : > { %772 = vmatprep.subr.bf16.mxu0 (!%p190_p2), %v855_v4  ;;  %828 = vmatprep.subr.bf16.mxu1 (!%p190_p2), %v855_v4 }
   0xd   : > { %s1058_s20 = smov (!%p219_p3, %s719_s20), 15 }
   0xe   : > { %s842_s8 = smul.u32 12, %s1058_s20  ;;  %s722_s11 = sshll.u32 %s1058_s20, 3 }
   0xf   : > { %773 = vmatpush3.bf16.msra.mxu0 %v856_v5  ;;  %836 = vmatpush3.bf16.msra.mxu1 %v856_v5  ;;  %s229_s14 = scalar_lea.vmem %s1056_s5, %s722_s11 }
  0x10   : > { %774 = vmatprep.subr.bf16.mxu0 %v857_v6  ;;  %829 = vmatprep.subr.bf16.mxu1 %v857_v6  ;;  %s996_s15 = scalar_lea.vmem %s1051_s0, %s842_s8 }
  0x11   : > { %v869_v11 = vld [vmem:[%s996_s15 + $0x4] ss:$12 sps:$4 sm:$0xff]   ;;  %v872_v12 = vld [vmem:[%s996_s15 + $0x4c] ss:$12 sps:$4 sm:$0xff]   ;;  %v870_v20 = vld [vmem:[%s996_s15 + $0x48] ss:$12 sps:$4 sm:$0xff]  }
  0x12   : > { %504 = vmatprep.mubr.bf16.mxu0 %v869_v11  ;;  %528 = vmatprep.mubr.bf16.mxu1 %v872_v12  ;;  %v867_v19 = vld [vmem:[%s996_s15] ss:$12 sps:$4 sm:$0xff]   ;;  %v875_v21 = vld [vmem:[%s996_s15 + $0x1c] ss:$12 sps:$4 sm:$0xff]   ;;  %v878_v24 = vld [vmem:[%s996_s15 + $0x18] ss:$12 sps:$4 sm:$0xff]  }
  0x13   : > { %775 = vmatpush3.bf16.msra.mxu0 %v858_v7  ;;  %837 = vmatpush3.bf16.msra.mxu1 %v858_v7  ;;  %v877_v23 = vld [vmem:[%s996_s15 + $0x8] ss:$12 sps:$4 sm:$0xff]   ;;  %v879_v25 = vld [vmem:[%s996_s15 + $0x20] ss:$12 sps:$4 sm:$0xff]   ;;  %v882_v27 = vld [vmem:[%s996_s15 + $0x38] ss:$12 sps:$4 sm:$0xff]  }
  0x14   : > { %776 = vmatprep.subr.bf16.mxu0 %v859_v8  ;;  %830 = vmatprep.subr.bf16.mxu1 %v859_v8  ;;  %v880_v26 = vld [vmem:[%s996_s15 + $0x34] ss:$12 sps:$4 sm:$0xff]   ;;  %v883_v28 = vld [vmem:[%s996_s15 + $0x30] ss:$12 sps:$4 sm:$0xff]  }
  0x15   : > { %v884_v29 = vld [vmem:[%s996_s15 + $0x50] ss:$12 sps:$4 sm:$0xff]  }
  0x17   : > { %777 = vmatpush3.bf16.msra.mxu0 %v860_v9  ;;  %838 = vmatpush3.bf16.msra.mxu1 %v860_v9 }
  0x18   : > { %778 = vmatprep.subr.bf16.mxu0 %v861_v10  ;;  %831 = vmatprep.subr.bf16.mxu1 %v861_v10 }
  0x1b   : > { %779 = vmatpush3.bf16.msra.mxu0 %v862_v13  ;;  %839 = vmatpush3.bf16.msra.mxu1 %v862_v13 }
  0x1c   : > { %780 = vmatprep.subr.bf16.mxu0 %v863_v14  ;;  %832 = vmatprep.subr.bf16.mxu1 %v863_v14 }
  0x1f   : > { %781 = vmatpush3.bf16.msra.mxu0 %v864_v15  ;;  %840 = vmatpush3.bf16.msra.mxu1 %v864_v15 }
  0x20   : > { %782 = vmatprep.subr.bf16.mxu0 %v865_v16  ;;  %833 = vmatprep.subr.bf16.mxu1 %v865_v16 }
  0x23   : > { %783 = vmatpush3.bf16.msra.mxu0 %v866_v17  ;;  %841 = vmatpush3.bf16.msra.mxu1 %v866_v17 }
  0x24   : > { %814 = vmatprep.subr.bf16.mxu1 %v873_v18 }
  0x26   : > { %505 = vmatmul.mubr.bf16.vlgmr.msra.gmra.mrb[0].mxu0 %v867_v19  ;;  %529 = vmatmul.mubr.bf16.vlgmr.msra.gmra.mrb[0].mxu1 %v870_v20 }
  0x27   : > { %815 = vmatpush3.bf16.msra.mxu1 %v873_v18  ;;  %512 = vmatprep.mubr.bf16.mxu0 %v875_v21 }
  0x28   : > { %816 = vmatprep.subr.bf16.mxu1 %v874_v22  ;;  %818 = vmatprep.mubr.msk.bf16.mxu1 %vm459_vm0, %v877_v23 }
  0x2b   : > { %817 = vmatpush3.bf16.msra.mxu1 %v874_v22 }
  0x2e   : > { %513 = vmatmul.mubr.bf16.gmra.mrb[4].mxu0 %v878_v24  ;;  %819 = vmatmul.mubr.msk.bf16.vlgmr.msra.gmra.mrb[4].mxu1 %vm459_vm0, %v879_v25 }
  0x2f   : > { %520 = vmatprep.mubr.bf16.mxu0 %v880_v26  ;;  %822 = vmatprep.mubr.msk.bf16.mxu1 %vm459_vm0, %v882_v27 }
  0x36   : > { %521 = vmatmul.mubr.bf16.gmra.mrb[8].mxu0 %v883_v28  ;;  %823 = vmatmul.mubr.msk.bf16.gmra.mrb[8].mxu1 %vm459_vm0, %v884_v29 }
  0xf9   : > { %v784_v30 = vpop.f32.mrb[0].mxu0  ;;  %v802_v31 = vpop.f32.mrb[0].mxu1 }
  0xfa   : > { %v785_v32 = vpop.f32.mrb[1].mxu0  ;;  %v803_v33 = vpop.f32.mrb[1].mxu1 }
  0xfb   : > { %v786_v34 = vadd.f32 %v785_v32, %v784_v30  ;;  %v787_v35 = vpop.f32.mrb[2].mxu0  ;;  %v804_v36 = vadd.f32 %v803_v33, %v802_v31  ;;  %v805_v37 = vpop.f32.mrb[2].mxu1 }
  0xfc   : > { %v788_v38 = vpop.f32.mrb[3].mxu0  ;;  %v806_v39 = vpop.f32.mrb[3].mxu1 }
  0xfd   : > { %v789_v40 = vadd.f32 %v788_v38, %v787_v35  ;;  %v807_v41 = vadd.f32 %v806_v39, %v805_v37  ;;  %v507_v45 = vadd.f32 %v786_v34, %v723_v42  ;;  %v531_v62 = vadd.f32 %v804_v36, %v723_v42 }
  0xff   : > { %v510_v52 = vadd.f32 %v789_v40, %v723_v42  ;;  %v534_v6 = vadd.f32 %v807_v41, %v723_v42 }
 0x101   : > { %v790_v43 = vpop.f32.mrb[4].mxu0  ;;  %v820_v44 = vpop.f32.mrb[4].mxu1 }
 0x102   : > { %v791_v46 = vpop.f32.mrb[5].mxu0  ;;  %v571_v47 = vpop.f32.mrb[5].mxu1 }
 0x103   : > { %v792_v48 = vadd.f32 %v791_v46, %v790_v43  ;;  %v572_v49 = vadd.f32 %v571_v47, %v507_v45  ;;  %v793_v50 = vpop.f32.mrb[6].mxu0  ;;  %v821_v51 = vpop.f32.mrb[6].mxu1 }
 0x104   : > { %v794_v53 = vpop.f32.mrb[7].mxu0  ;;  %v574_v54 = vpop.f32.mrb[7].mxu1 }
 0x105   : > { %v515_v55 = vadd.f32 %v792_v48, %v723_v42  ;;  %v758_v56 = vmul.f32 -1.442695, %v572_v49  ;;  %v795_v57 = vadd.f32 %v794_v53, %v793_v50  ;;  %v575_v58 = vadd.f32 %v574_v54, %v510_v52 }
 0x107   : > { %v580_v59 = vadd.f32 %v820_v44, %v515_v55  ;;  %885 = vpow2.f32 %v758_v56  ;;  %v518_v60 = vadd.f32 %v795_v57, %v723_v42  ;;  %v759_v61 = vmul.f32 -1.442695, %v575_v58 }
 0x109   : > { %v760_v63 = vmul.f32 -1.442695, %v580_v59  ;;  %v583_v0 = vadd.f32 %v821_v51, %v518_v60  ;;  %887 = vpow2.f32 %v759_v61  ;;  %v796_v1 = vpop.f32.mrb[8].mxu0  ;;  %v824_v2 = vpop.f32.mrb[8].mxu1 }
 0x10a   : > { %v596_v3 = vadd.f32 %v824_v2, %v531_v62  ;;  %v797_v4 = vpop.f32.mrb[9].mxu0  ;;  %v587_v5 = vpop.f32.mrb[9].mxu1 }
 0x10b   : > { %889 = vpow2.f32 %v760_v63  ;;  %v761_v7 = vmul.f32 -1.442695, %v583_v0  ;;  %v798_v8 = vadd.f32 %v797_v4, %v796_v1  ;;  %v799_v9 = vpop.f32.mrb[10].mxu0  ;;  %v825_v10 = vpop.f32.mrb[10].mxu1 }
 0x10c   : > { %v764_v11 = vmul.f32 -1.442695, %v596_v3  ;;  %v599_v12 = vadd.f32 %v825_v10, %v534_v6  ;;  %v800_v13 = vpop.f32.mrb[11].mxu0  ;;  %v590_v14 = vpop.f32.mrb[11].mxu1 }
 0x10d   : > { %891 = vpow2.f32 %v761_v7  ;;  %v523_v15 = vadd.f32 %v798_v8, %v723_v42  ;;  %v801_v16 = vadd.f32 %v800_v13, %v799_v9 }
 0x10e   : > { %893 = vpow2.f32 %v764_v11  ;;  %v765_v17 = vmul.f32 -1.442695, %v599_v12 }
 0x10f   : > { %v588_v18 = vadd.f32 %v587_v5, %v523_v15  ;;  %v526_v19 = vadd.f32 %v801_v16, %v723_v42 }
 0x110   : > { %895 = vpow2.f32 %v765_v17 }
 0x111   : > { %v886_v20 = vpop.eup %885  ;;  %v762_v21 = vmul.f32 -1.442695, %v588_v18  ;;  %v591_v22 = vadd.f32 %v590_v14, %v526_v19 }
 0x112   : > { %v626_v23 = vadd.f32 1.0, %v886_v20 }
 0x113   : > { %v888_v24 = vpop.eup %887  ;;  %897 = vpow2.f32 %v762_v21  ;;  %v763_v25 = vmul.f32 -1.442695, %v591_v22 }
 0x114   : > { %899 = vrcp.f32 %v626_v23  ;;  %v627_v26 = vadd.f32 1.0, %v888_v24 }
 0x115   : > { %v890_v27 = vpop.eup %889  ;;  %901 = vpow2.f32 %v763_v25 }
 0x116   : > { %v628_v28 = vadd.f32 1.0, %v890_v27  ;;  %903 = vrcp.f32 %v627_v26 }
 0x117   : > { %v892_v29 = vpop.eup %891 }
 0x118   : > { %v894_v30 = vpop.eup %893  ;;  %905 = vrcp.f32 %v628_v28  ;;  %v629_v31 = vadd.f32 1.0, %v892_v29 }
 0x119   : > { %v632_v32 = vadd.f32 1.0, %v894_v30 }
 0x11a   : > { %v896_v33 = vpop.eup %895  ;;  %907 = vrcp.f32 %v629_v31 }
 0x11b   : > { %909 = vrcp.f32 %v632_v32  ;;  %v633_v34 = vadd.f32 1.0, %v896_v33 }
 0x11d   : > { %v898_v35 = vpop.eup %897  ;;  %911 = vrcp.f32 %v633_v34 }
 0x11e   : > { %v900_v36 = vpop.eup %899  ;;  %v630_v37 = vadd.f32 1.0, %v898_v35 }
 0x11f   : > { %v902_v38 = vpop.eup %901  ;;  %650 = vst [vmem:[%s229_s14] sm:$0xff] %v900_v36 }
 0x120   : > { %v904_v39 = vpop.eup %903  ;;  %913 = vrcp.f32 %v630_v37  ;;  %v631_v40 = vadd.f32 1.0, %v902_v38 }
 0x121   : > { %651 = vst [vmem:[%s229_s14 + $0x8] sm:$0xff] %v904_v39 }
 0x122   : > { %v906_v41 = vpop.eup %905  ;;  %915 = vrcp.f32 %v631_v40 }
 0x123   : > { %652 = vst [vmem:[%s229_s14 + $0x10] sm:$0xff] %v906_v41 }
 0x124   : > { %v908_v42 = vpop.eup %907 }
 0x125   : > { %v910_v43 = vpop.eup %909  ;;  %653 = vst [vmem:[%s229_s14 + $0x18] sm:$0xff] %v908_v42 }
 0x126   : > { %656 = vst [vmem:[%s229_s14 + $0x30] sm:$0xff] %v910_v43 }
 0x127   : > { %v912_v44 = vpop.eup %911 }
 0x128   : > { %657 = vst [vmem:[%s229_s14 + $0x38] sm:$0xff] %v912_v44 }
 0x12a   : > { %v914_v45 = vpop.eup %913 }
 0x12b   : > { %654 = vst [vmem:[%s229_s14 + $0x20] sm:$0xff] %v914_v45 }
 0x12c   : > { %v916_v46 = vpop.eup %915 }
 0x12d   : > { %655 = vst [vmem:[%s229_s14 + $0x28] sm:$0xff] %v916_v46 }
 0x12e PF: > { %s15_s18 = sadd.s32 1, %s923_s18  }
 0x12f   : > { %p12_p4 = scmp.ge.s32.totalorder %s15_s18, 4  }
 0x131   :  { %14 = sbr.rel (!%p12_p4) target bundleno = 1 (0x1), region = 70 }

</bundles_post_ra>
